<compile_context>
chip_gen: v6e
topology: v6e:2x2x1
jax: 0.10.0
libtpu: 0.0.40
codegen_flags: <defaults>
</compile_context>

<pallas_src>
import functools

import jax
import jax.numpy as jnp
from jax.experimental import pallas as pl
from jax.experimental.pallas import tpu as pltpu

WINDOW_SIZES = (3, 4, 5)
KW = max(WINDOW_SIZES)          # 5
NPAIR = (KW + 1) // 2           # 3 shift-pairs (last pair's 2nd half is zero)
LANE = 128


def _round_up(x, m):
    return (x + m - 1) // m * m


def _pick_tb(batch, tb_max=128):
    """Batch block: as large as possible (<=128, mult of 8), but keep >=2 grid
    steps when the batch allows it so both v7x TensorCores get work."""
    bp = _round_up(batch, 8)
    tb = min(tb_max, bp)
    if bp > 8 and bp // tb < 2:
        tb = _round_up((bp + 1) // 2, 8)
    return tb


def cnn_kernel(ids_ref, emb_ref, wpair_ref, ball_ref, fcw_ref, fcb_ref,
               out_ref, xp_ref, m4_ref, m5_ref, *, H):
    # ids_ref  : (TB, L)          int32  token ids for this batch block
    # emb_ref  : (Vp, Ep)         bf16   embedding table (VMEM resident)
    # wpair_ref: (NPAIR, 2Ep, H3) bf16   paired conv weights (win3|4|5 packed in H3)
    # ball_ref : (1, H3)          f32    packed conv bias
    # fcw_ref  : (H3, Tp)         bf16   linear weight (padded)
    # fcb_ref  : (1, Tp)          f32    linear bias (padded)
    # out_ref  : (TB, Tp)         f32    logits block
    # xp_ref   : (L+2*NPAIR-1, TB, Ep) bf16  conv-padded time-major activations
    # m4_ref, m5_ref : (TB, H3)   f32    pooling snapshots (win-4 / win-5 valid range)
    TB, L = ids_ref.shape
    Vp, Ep = emb_ref.shape
    H3 = wpair_ref.shape[2]

    zero_row = jnp.zeros((TB, Ep), xp_ref.dtype)
    xp_ref[0] = zero_row                          # left conv pad row
    for r in range(L + 1, L + 2 * NPAIR - 1):     # right pad + shift-overrun rows
        xp_ref[r] = zero_row

    # ---- fused embedding gather: one-hot MXU matmul per time step ----------
    # TODO(synk): for large extword vocabularies the table will not fit VMEM;
    # switch to an HBM ref (memory_space=pl.ANY) + per-row DMA gather.
    emb = emb_ref[...]
    iota_v = jax.lax.broadcasted_iota(jnp.int32, (TB, Vp), 1)
    for l in range(L):
        onehot = (ids_ref[:, l:l + 1] == iota_v).astype(jnp.bfloat16)   # (TB, Vp)
        xl = jnp.dot(onehot, emb, preferred_element_type=jnp.float32)   # (TB, Ep)
        xp_ref[l + 1] = xl.astype(xp_ref.dtype)

    # ---- conv (3 fused windows, paired K=2*Ep shifts) + running max pool ----
    # acc[t] = sum_k xp[t+k] @ W_all[k]; valid output rows: win3 -> L,
    # win4 -> L-1, win5 -> L-2.  Running max with snapshots after row L-3
    # (win5) and L-2 (win4); bias/ReLU applied after pooling (both commute
    # with max since they are monotone / per-channel constant).
    m = None
    for t in range(L):
        xk = jnp.concatenate([xp_ref[t], xp_ref[t + 1]], axis=-1)       # (TB, 2Ep)
        a = jnp.dot(xk, wpair_ref[0], preferred_element_type=jnp.float32)
        for j in range(1, NPAIR):
            xk = jnp.concatenate([xp_ref[t + 2 * j], xp_ref[t + 2 * j + 1]],
                                 axis=-1)
            a = a + jnp.dot(xk, wpair_ref[j], preferred_element_type=jnp.float32)
        m = a if t == 0 else jnp.maximum(m, a)
        if t == L - 3:
            m5_ref[...] = m
        if t == L - 2:
            m4_ref[...] = m
    m3 = m                                                               # (TB, H3)

    lane = jax.lax.broadcasted_iota(jnp.int32, (TB, H3), 1)
    pooled = jnp.where(lane < H, m3,
                       jnp.where(lane < 2 * H, m4_ref[...], m5_ref[...]))
    pooled = jnp.maximum(pooled + ball_ref[...], 0.0)                    # bias + ReLU

    logits = jnp.dot(pooled.astype(fcw_ref.dtype), fcw_ref[...],
                     preferred_element_type=jnp.float32) + fcb_ref[...]
    out_ref[...] = logits.astype(out_ref.dtype)


def prepare_params(params):
    """Pack 3H contiguously, pair conv shifts along K, pad V/E/3H/T to lane
    multiples, cast matmul weights to bf16."""
    V, E = params["extword_emb"].shape
    H = params["b3"].shape[0]
    T = params["fcb"].shape[0]
    Vp = _round_up(V, LANE)
    Ep = _round_up(E, LANE)
    H3 = _round_up(3 * H, LANE)
    Tp = _round_up(T, LANE)

    emb = jnp.zeros((Vp, Ep), jnp.float32).at[:V, :E].set(params["extword_emb"])

    wall = jnp.zeros((2 * NPAIR, Ep, H3), jnp.float32)   # shift slot 5 stays zero
    ball = jnp.zeros((1, H3), jnp.float32)
    fcw = jnp.zeros((H3, Tp), jnp.float32)
    fcb = jnp.zeros((1, Tp), jnp.float32)
    for i, w in enumerate(WINDOW_SIZES):
        wall = wall.at[:w, :E, i * H:(i + 1) * H].set(params[f"w{w}"])
        ball = ball.at[0, i * H:(i + 1) * H].set(params[f"b{w}"])
        fcw = fcw.at[i * H:(i + 1) * H, :T].set(params["fcw"][i * H:(i + 1) * H, :])
    fcb = fcb.at[0, :T].set(params["fcb"])

    # Pair adjacent shifts along K: wpair[j] = [wall[2j]; wall[2j+1]] -> K=2*Ep.
    wpair = wall.reshape(NPAIR, 2 * Ep, H3)

    return {
        "emb": emb.astype(jnp.bfloat16),
        "wpair": wpair.astype(jnp.bfloat16),
        "ball": ball,
        "fcw": fcw.astype(jnp.bfloat16),
        "fcb": fcb,
        "H": H, "T": T, "Vp": Vp, "Ep": Ep, "H3": H3, "Tp": Tp,
    }


def cnn_forward(token_ids, prep, tb=None):
    B, L = token_ids.shape
    # Conv1d(kernel=5, padding=1) needs L >= 3 for a non-empty output.
    assert L >= KW - 2, "sequence too short for window-5 conv"
    Vp, Ep, H3, Tp = prep["Vp"], prep["Ep"], prep["H3"], prep["Tp"]
    # Embedding table must fit comfortably in VMEM for the fused gather.
    assert Vp * Ep * 2 <= 8 * 1024 * 1024, "vocab too large for VMEM gather"

    if tb is None:
        tb = _pick_tb(B)
    assert tb % 8 == 0, "batch block must be a sublane multiple"
    Bp = _round_up(B, tb)
    ids = jnp.pad(token_ids.astype(jnp.int32), ((0, Bp - B), (0, 0)))

    out = pl.pallas_call(
        functools.partial(cnn_kernel, H=prep["H"]),
        out_shape=jax.ShapeDtypeStruct((Bp, Tp), jnp.float32),
        grid_spec=pltpu.PrefetchScalarGridSpec(
            num_scalar_prefetch=0,
            grid=(Bp // tb,),
            in_specs=[
                pl.BlockSpec((tb, L), lambda b: (b, 0)),           # token ids
                pl.BlockSpec((Vp, Ep), lambda b: (0, 0)),          # emb table
                pl.BlockSpec((NPAIR, 2 * Ep, H3), lambda b: (0, 0, 0)),
                pl.BlockSpec((1, H3), lambda b: (0, 0)),
                pl.BlockSpec((H3, Tp), lambda b: (0, 0)),
                pl.BlockSpec((1, Tp), lambda b: (0, 0)),
            ],
            out_specs=pl.BlockSpec((tb, Tp), lambda b: (b, 0)),
            scratch_shapes=[
                pltpu.VMEM((L + 2 * NPAIR - 1, tb, Ep), jnp.bfloat16),  # xp
                pltpu.VMEM((tb, H3), jnp.float32),                      # m4 snapshot
                pltpu.VMEM((tb, H3), jnp.float32),                      # m5 snapshot
            ],
        ),
        compiler_params=pltpu.CompilerParams(
            dimension_semantics=("parallel",),
            vmem_limit_bytes=32 * 1024 * 1024),
    )(ids, prep["emb"], prep["wpair"], prep["ball"], prep["fcw"], prep["fcb"])

    return out[:B, :prep["T"]]


def cnn_reference(token_ids, params):
    # Pure-JAX reference matching PyTorch eval-mode semantics, using the same
    # bf16 weight/activation quantization (f32 accumulation) as the kernel.
    emb = params["extword_emb"].astype(jnp.bfloat16)
    x = jnp.take(emb, token_ids, axis=0)                  # (B, L, E) bf16
    xp = jnp.pad(x, ((0, 0), (1, 1), (0, 0)))
    B, L, E = x.shape
    feats = []
    for w in WINDOW_SIZES:
        W = params[f"w{w}"].astype(jnp.bfloat16)          # (w, E, H)
        b = params[f"b{w}"]
        l_out = L + 3 - w
        acc = jnp.zeros((B, l_out, W.shape[2]), jnp.float32)
        for k in range(w):
            acc = acc + jnp.einsum("ble,eh->blh", xp[:, k:k + l_out, :], W[k],
                                   preferred_element_type=jnp.float32)
        acc = jax.nn.relu(acc + b)
        feats.append(jnp.max(acc, axis=1))                # (B, H)
    feat = jnp.concatenate(feats, axis=1).astype(jnp.bfloat16)
    fcw = params["fcw"].astype(jnp.bfloat16)
    return jnp.dot(feat, fcw,
                   preferred_element_type=jnp.float32) + params["fcb"]


def make_params(key, vocab_size, embedding_dim, hidden_size, tag_size):
    ks = jax.random.split(key, 9)
    scale = 0.1
    params = {
        "extword_emb": jax.random.normal(
            ks[0], (vocab_size, embedding_dim), jnp.float32) * scale,
        "fcw": jax.random.normal(
            ks[1], (3 * hidden_size, tag_size), jnp.float32) * scale,
        "fcb": jax.random.normal(ks[2], (tag_size,), jnp.float32) * scale,
    }
    for i, w in enumerate(WINDOW_SIZES):
        # Conv1d weight stored as (w, E, H) == PyTorch (H, E, w) transposed.
        params[f"w{w}"] = jax.random.normal(
            ks[3 + 2 * i], (w, embedding_dim, hidden_size), jnp.float32) * scale
        params[f"b{w}"] = jax.random.normal(
            ks[4 + 2 * i], (hidden_size,), jnp.float32) * scale
    return params


if __name__ == "__main__":
    B, L = 12, 8          # batch (padded to 16 -> 2 grid steps), seq len
    V, E = 50, 32         # extword vocab size, embedding dim
    H, T = 32, 5          # args.hidden_size, vocab.tag_size

    key = jax.random.PRNGKey(0)
    pkey, ikey = jax.random.split(key)
    params = make_params(pkey, V, E, H, T)
    token_ids = jax.random.randint(ikey, (B, L), 0, V, dtype=jnp.int32)

    prep = prepare_params(params)
    out = cnn_forward(token_ids, prep)
    out = jax.block_until_ready(out)

    ref = cnn_reference(token_ids, params)
    assert out.shape == (B, T)
    assert jnp.allclose(out, ref, atol=2e-3, rtol=2e-3), (out, ref)
    print("KERNEL_OK")
</pallas_src>

<mosaic_0001>
module attributes {stable_mosaic.version = 11 : i64} {
  func.func @cnn_kernel(%arg0: i32, %arg1: memref<8x8xi32, #tpu.memory_space<vmem>>, %arg2: memref<128x128xbf16, #tpu.memory_space<vmem>>, %arg3: memref<3x256x128xbf16, #tpu.memory_space<vmem>>, %arg4: memref<1x128xf32, #tpu.memory_space<vmem>>, %arg5: memref<128x128xbf16, #tpu.memory_space<vmem>>, %arg6: memref<1x128xf32, #tpu.memory_space<vmem>>, %arg7: memref<8x128xf32, #tpu.memory_space<vmem>>, %arg8: memref<13x8x128xbf16, #tpu.memory_space<vmem>>, %arg9: memref<8x128xf32, #tpu.memory_space<vmem>>, %arg10: memref<8x128xf32, #tpu.memory_space<vmem>>) attributes {dimension_semantics = [#tpu.dimension_semantics<parallel>], iteration_bounds = array<i64: 2>, scalar_prefetch = 0 : i64, scratch_operands = 3 : i64, tpu.core_type = #tpu.core_type<tc>, window_params = [{transform_indices = @transform_0, window_bounds = array<i64: 8, 8>}, {pipeline_mode = #tpu.pipeline_mode<synchronous>, transform_indices = @transform_1, window_bounds = array<i64: 128, 128>}, {pipeline_mode = #tpu.pipeline_mode<synchronous>, transform_indices = @transform_2, window_bounds = array<i64: 3, 256, 128>}, {pipeline_mode = #tpu.pipeline_mode<synchronous>, transform_indices = @transform_3, window_bounds = array<i64: 1, 128>}, {pipeline_mode = #tpu.pipeline_mode<synchronous>, transform_indices = @transform_4, window_bounds = array<i64: 128, 128>}, {pipeline_mode = #tpu.pipeline_mode<synchronous>, transform_indices = @transform_5, window_bounds = array<i64: 1, 128>}, {transform_indices = @transform_6, window_bounds = array<i64: 8, 128>}]} {
    %cst = arith.constant 0.000000e+00 : bf16
    %0 = vector.broadcast %cst : bf16 to vector<8x128xbf16>
    %c0 = arith.constant 0 : index
    %c0_0 = arith.constant 0 : index
    %c0_1 = arith.constant 0 : index
    %1 = vector.load %arg8[%c0, %c0_0, %c0_1] : memref<13x8x128xbf16, #tpu.memory_space<vmem>>, vector<1x8x128xbf16>
    %2 = vector.shape_cast %1 : vector<1x8x128xbf16> to vector<8x128xbf16>
    %3 = vector.shape_cast %0 : vector<8x128xbf16> to vector<1x8x128xbf16>
    tpu.vector_store %arg8[%c0, %c0_0, %c0_1], %3 {strides = array<i32>} : memref<13x8x128xbf16, #tpu.memory_space<vmem>>, vector<1x8x128xbf16>,
    %c9 = arith.constant 9 : index
    %c0_2 = arith.constant 0 : index
    %c0_3 = arith.constant 0 : index
    %4 = vector.load %arg8[%c9, %c0_2, %c0_3] : memref<13x8x128xbf16, #tpu.memory_space<vmem>>, vector<1x8x128xbf16>
    %5 = vector.shape_cast %4 : vector<1x8x128xbf16> to vector<8x128xbf16>
    %6 = vector.shape_cast %0 : vector<8x128xbf16> to vector<1x8x128xbf16>
    tpu.vector_store %arg8[%c9, %c0_2, %c0_3], %6 {strides = array<i32>} : memref<13x8x128xbf16, #tpu.memory_space<vmem>>, vector<1x8x128xbf16>,
    %c10 = arith.constant 10 : index
    %c0_4 = arith.constant 0 : index
    %c0_5 = arith.constant 0 : index
    %7 = vector.load %arg8[%c10, %c0_4, %c0_5] : memref<13x8x128xbf16, #tpu.memory_space<vmem>>, vector<1x8x128xbf16>
    %8 = vector.shape_cast %7 : vector<1x8x128xbf16> to vector<8x128xbf16>
    %9 = vector.shape_cast %0 : vector<8x128xbf16> to vector<1x8x128xbf16>
    tpu.vector_store %arg8[%c10, %c0_4, %c0_5], %9 {strides = array<i32>} : memref<13x8x128xbf16, #tpu.memory_space<vmem>>, vector<1x8x128xbf16>,
    %c11 = arith.constant 11 : index
    %c0_6 = arith.constant 0 : index
    %c0_7 = arith.constant 0 : index
    %10 = vector.load %arg8[%c11, %c0_6, %c0_7] : memref<13x8x128xbf16, #tpu.memory_space<vmem>>, vector<1x8x128xbf16>
    %11 = vector.shape_cast %10 : vector<1x8x128xbf16> to vector<8x128xbf16>
    %12 = vector.shape_cast %0 : vector<8x128xbf16> to vector<1x8x128xbf16>
    tpu.vector_store %arg8[%c11, %c0_6, %c0_7], %12 {strides = array<i32>} : memref<13x8x128xbf16, #tpu.memory_space<vmem>>, vector<1x8x128xbf16>,
    %c12 = arith.constant 12 : index
    %c0_8 = arith.constant 0 : index
    %c0_9 = arith.constant 0 : index
    %13 = vector.load %arg8[%c12, %c0_8, %c0_9] : memref<13x8x128xbf16, #tpu.memory_space<vmem>>, vector<1x8x128xbf16>
    %14 = vector.shape_cast %13 : vector<1x8x128xbf16> to vector<8x128xbf16>
    %15 = vector.shape_cast %0 : vector<8x128xbf16> to vector<1x8x128xbf16>
    tpu.vector_store %arg8[%c12, %c0_8, %c0_9], %15 {strides = array<i32>} : memref<13x8x128xbf16, #tpu.memory_space<vmem>>, vector<1x8x128xbf16>,
    %c0_10 = arith.constant 0 : index
    %c0_11 = arith.constant 0 : index
    %16 = vector.load %arg2[%c0_10, %c0_11] : memref<128x128xbf16, #tpu.memory_space<vmem>>, vector<128x128xbf16>
    %17 = tpu.iota {dimensions = array<i32: 1>} : vector<8x128xi32>
    %c0_12 = arith.constant 0 : index
    %c0_13 = arith.constant 0 : index
    %18 = vector.load %arg1[%c0_12, %c0_13] : memref<8x8xi32, #tpu.memory_space<vmem>>, vector<8x1xi32>
    %19 = vector.broadcast %18 : vector<8x1xi32> to vector<8x128xi32>
    %20 = arith.cmpi eq, %19, %17 : vector<8x128xi32>
    %21 = arith.extui %20 : vector<8x128xi1> to vector<8x128xi32>
    %22 = arith.sitofp %21 : vector<8x128xi32> to vector<8x128xf32>
    %23 = arith.truncf %22 : vector<8x128xf32> to vector<8x128xbf16>
    %cst_14 = arith.constant dense<0.000000e+00> : vector<8x128xf32>
    %24 = tpu.matmul %23, %16, %cst_14 {dimension_numbers = #tpu.dot_dimension_numbers<[1], [0], [0], [1], [0, 0, 1, 1], [], []>} : vector<8x128xbf16>, vector<128x128xbf16>, vector<8x128xf32> -> vector<8x128xf32>
    %25 = arith.truncf %24 : vector<8x128xf32> to vector<8x128xbf16>
    %c1 = arith.constant 1 : index
    %c0_15 = arith.constant 0 : index
    %c0_16 = arith.constant 0 : index
    %26 = vector.load %arg8[%c1, %c0_15, %c0_16] : memref<13x8x128xbf16, #tpu.memory_space<vmem>>, vector<1x8x128xbf16>
    %27 = vector.shape_cast %26 : vector<1x8x128xbf16> to vector<8x128xbf16>
    %28 = vector.shape_cast %25 : vector<8x128xbf16> to vector<1x8x128xbf16>
    tpu.vector_store %arg8[%c1, %c0_15, %c0_16], %28 {strides = array<i32>} : memref<13x8x128xbf16, #tpu.memory_space<vmem>>, vector<1x8x128xbf16>,
    %c0_17 = arith.constant 0 : index
    %c1_18 = arith.constant 1 : index
    %29 = vector.load %arg1[%c0_17, %c1_18] : memref<8x8xi32, #tpu.memory_space<vmem>>, vector<8x1xi32>
    %30 = vector.broadcast %29 : vector<8x1xi32> to vector<8x128xi32>
    %31 = arith.cmpi eq, %30, %17 : vector<8x128xi32>
    %32 = arith.extui %31 : vector<8x128xi1> to vector<8x128xi32>
    %33 = arith.sitofp %32 : vector<8x128xi32> to vector<8x128xf32>
    %34 = arith.truncf %33 : vector<8x128xf32> to vector<8x128xbf16>
    %cst_19 = arith.constant dense<0.000000e+00> : vector<8x128xf32>
    %35 = tpu.matmul %34, %16, %cst_19 {dimension_numbers = #tpu.dot_dimension_numbers<[1], [0], [0], [1], [0, 0, 1, 1], [], []>} : vector<8x128xbf16>, vector<128x128xbf16>, vector<8x128xf32> -> vector<8x128xf32>
    %36 = arith.truncf %35 : vector<8x128xf32> to vector<8x128xbf16>
    %c2 = arith.constant 2 : index
    %c0_20 = arith.constant 0 : index
    %c0_21 = arith.constant 0 : index
    %37 = vector.load %arg8[%c2, %c0_20, %c0_21] : memref<13x8x128xbf16, #tpu.memory_space<vmem>>, vector<1x8x128xbf16>
    %38 = vector.shape_cast %37 : vector<1x8x128xbf16> to vector<8x128xbf16>
    %39 = vector.shape_cast %36 : vector<8x128xbf16> to vector<1x8x128xbf16>
    tpu.vector_store %arg8[%c2, %c0_20, %c0_21], %39 {strides = array<i32>} : memref<13x8x128xbf16, #tpu.memory_space<vmem>>, vector<1x8x128xbf16>,
    %c0_22 = arith.constant 0 : index
    %c2_23 = arith.constant 2 : index
    %40 = vector.load %arg1[%c0_22, %c2_23] : memref<8x8xi32, #tpu.memory_space<vmem>>, vector<8x1xi32>
    %41 = vector.broadcast %40 : vector<8x1xi32> to vector<8x128xi32>
    %42 = arith.cmpi eq, %41, %17 : vector<8x128xi32>
    %43 = arith.extui %42 : vector<8x128xi1> to vector<8x128xi32>
    %44 = arith.sitofp %43 : vector<8x128xi32> to vector<8x128xf32>
    %45 = arith.truncf %44 : vector<8x128xf32> to vector<8x128xbf16>
    %cst_24 = arith.constant dense<0.000000e+00> : vector<8x128xf32>
    %46 = tpu.matmul %45, %16, %cst_24 {dimension_numbers = #tpu.dot_dimension_numbers<[1], [0], [0], [1], [0, 0, 1, 1], [], []>} : vector<8x128xbf16>, vector<128x128xbf16>, vector<8x128xf32> -> vector<8x128xf32>
    %47 = arith.truncf %46 : vector<8x128xf32> to vector<8x128xbf16>
    %c3 = arith.constant 3 : index
    %c0_25 = arith.constant 0 : index
    %c0_26 = arith.constant 0 : index
    %48 = vector.load %arg8[%c3, %c0_25, %c0_26] : memref<13x8x128xbf16, #tpu.memory_space<vmem>>, vector<1x8x128xbf16>
    %49 = vector.shape_cast %48 : vector<1x8x128xbf16> to vector<8x128xbf16>
    %50 = vector.shape_cast %47 : vector<8x128xbf16> to vector<1x8x128xbf16>
    tpu.vector_store %arg8[%c3, %c0_25, %c0_26], %50 {strides = array<i32>} : memref<13x8x128xbf16, #tpu.memory_space<vmem>>, vector<1x8x128xbf16>,
    %c0_27 = arith.constant 0 : index
    %c3_28 = arith.constant 3 : index
    %51 = vector.load %arg1[%c0_27, %c3_28] : memref<8x8xi32, #tpu.memory_space<vmem>>, vector<8x1xi32>
    %52 = vector.broadcast %51 : vector<8x1xi32> to vector<8x128xi32>
    %53 = arith.cmpi eq, %52, %17 : vector<8x128xi32>
    %54 = arith.extui %53 : vector<8x128xi1> to vector<8x128xi32>
    %55 = arith.sitofp %54 : vector<8x128xi32> to vector<8x128xf32>
    %56 = arith.truncf %55 : vector<8x128xf32> to vector<8x128xbf16>
    %cst_29 = arith.constant dense<0.000000e+00> : vector<8x128xf32>
    %57 = tpu.matmul %56, %16, %cst_29 {dimension_numbers = #tpu.dot_dimension_numbers<[1], [0], [0], [1], [0, 0, 1, 1], [], []>} : vector<8x128xbf16>, vector<128x128xbf16>, vector<8x128xf32> -> vector<8x128xf32>
    %58 = arith.truncf %57 : vector<8x128xf32> to vector<8x128xbf16>
    %c4 = arith.constant 4 : index
    %c0_30 = arith.constant 0 : index
    %c0_31 = arith.constant 0 : index
    %59 = vector.load %arg8[%c4, %c0_30, %c0_31] : memref<13x8x128xbf16, #tpu.memory_space<vmem>>, vector<1x8x128xbf16>
    %60 = vector.shape_cast %59 : vector<1x8x128xbf16> to vector<8x128xbf16>
    %61 = vector.shape_cast %58 : vector<8x128xbf16> to vector<1x8x128xbf16>
    tpu.vector_store %arg8[%c4, %c0_30, %c0_31], %61 {strides = array<i32>} : memref<13x8x128xbf16, #tpu.memory_space<vmem>>, vector<1x8x128xbf16>,
    %c0_32 = arith.constant 0 : index
    %c4_33 = arith.constant 4 : index
    %62 = vector.load %arg1[%c0_32, %c4_33] : memref<8x8xi32, #tpu.memory_space<vmem>>, vector<8x1xi32>
    %63 = vector.broadcast %62 : vector<8x1xi32> to vector<8x128xi32>
    %64 = arith.cmpi eq, %63, %17 : vector<8x128xi32>
    %65 = arith.extui %64 : vector<8x128xi1> to vector<8x128xi32>
    %66 = arith.sitofp %65 : vector<8x128xi32> to vector<8x128xf32>
    %67 = arith.truncf %66 : vector<8x128xf32> to vector<8x128xbf16>
    %cst_34 = arith.constant dense<0.000000e+00> : vector<8x128xf32>
    %68 = tpu.matmul %67, %16, %cst_34 {dimension_numbers = #tpu.dot_dimension_numbers<[1], [0], [0], [1], [0, 0, 1, 1], [], []>} : vector<8x128xbf16>, vector<128x128xbf16>, vector<8x128xf32> -> vector<8x128xf32>
    %69 = arith.truncf %68 : vector<8x128xf32> to vector<8x128xbf16>
    %c5 = arith.constant 5 : index
    %c0_35 = arith.constant 0 : index
    %c0_36 = arith.constant 0 : index
    %70 = vector.load %arg8[%c5, %c0_35, %c0_36] : memref<13x8x128xbf16, #tpu.memory_space<vmem>>, vector<1x8x128xbf16>
    %71 = vector.shape_cast %70 : vector<1x8x128xbf16> to vector<8x128xbf16>
    %72 = vector.shape_cast %69 : vector<8x128xbf16> to vector<1x8x128xbf16>
    tpu.vector_store %arg8[%c5, %c0_35, %c0_36], %72 {strides = array<i32>} : memref<13x8x128xbf16, #tpu.memory_space<vmem>>, vector<1x8x128xbf16>,
    %c0_37 = arith.constant 0 : index
    %c5_38 = arith.constant 5 : index
    %73 = vector.load %arg1[%c0_37, %c5_38] : memref<8x8xi32, #tpu.memory_space<vmem>>, vector<8x1xi32>
    %74 = vector.broadcast %73 : vector<8x1xi32> to vector<8x128xi32>
    %75 = arith.cmpi eq, %74, %17 : vector<8x128xi32>
    %76 = arith.extui %75 : vector<8x128xi1> to vector<8x128xi32>
    %77 = arith.sitofp %76 : vector<8x128xi32> to vector<8x128xf32>
    %78 = arith.truncf %77 : vector<8x128xf32> to vector<8x128xbf16>
    %cst_39 = arith.constant dense<0.000000e+00> : vector<8x128xf32>
    %79 = tpu.matmul %78, %16, %cst_39 {dimension_numbers = #tpu.dot_dimension_numbers<[1], [0], [0], [1], [0, 0, 1, 1], [], []>} : vector<8x128xbf16>, vector<128x128xbf16>, vector<8x128xf32> -> vector<8x128xf32>
    %80 = arith.truncf %79 : vector<8x128xf32> to vector<8x128xbf16>
    %c6 = arith.constant 6 : index
    %c0_40 = arith.constant 0 : index
    %c0_41 = arith.constant 0 : index
    %81 = vector.load %arg8[%c6, %c0_40, %c0_41] : memref<13x8x128xbf16, #tpu.memory_space<vmem>>, vector<1x8x128xbf16>
    %82 = vector.shape_cast %81 : vector<1x8x128xbf16> to vector<8x128xbf16>
    %83 = vector.shape_cast %80 : vector<8x128xbf16> to vector<1x8x128xbf16>
    tpu.vector_store %arg8[%c6, %c0_40, %c0_41], %83 {strides = array<i32>} : memref<13x8x128xbf16, #tpu.memory_space<vmem>>, vector<1x8x128xbf16>,
    %c0_42 = arith.constant 0 : index
    %c6_43 = arith.constant 6 : index
    %84 = vector.load %arg1[%c0_42, %c6_43] : memref<8x8xi32, #tpu.memory_space<vmem>>, vector<8x1xi32>
    %85 = vector.broadcast %84 : vector<8x1xi32> to vector<8x128xi32>
    %86 = arith.cmpi eq, %85, %17 : vector<8x128xi32>
    %87 = arith.extui %86 : vector<8x128xi1> to vector<8x128xi32>
    %88 = arith.sitofp %87 : vector<8x128xi32> to vector<8x128xf32>
    %89 = arith.truncf %88 : vector<8x128xf32> to vector<8x128xbf16>
    %cst_44 = arith.constant dense<0.000000e+00> : vector<8x128xf32>
    %90 = tpu.matmul %89, %16, %cst_44 {dimension_numbers = #tpu.dot_dimension_numbers<[1], [0], [0], [1], [0, 0, 1, 1], [], []>} : vector<8x128xbf16>, vector<128x128xbf16>, vector<8x128xf32> -> vector<8x128xf32>
    %91 = arith.truncf %90 : vector<8x128xf32> to vector<8x128xbf16>
    %c7 = arith.constant 7 : index
    %c0_45 = arith.constant 0 : index
    %c0_46 = arith.constant 0 : index
    %92 = vector.load %arg8[%c7, %c0_45, %c0_46] : memref<13x8x128xbf16, #tpu.memory_space<vmem>>, vector<1x8x128xbf16>
    %93 = vector.shape_cast %92 : vector<1x8x128xbf16> to vector<8x128xbf16>
    %94 = vector.shape_cast %91 : vector<8x128xbf16> to vector<1x8x128xbf16>
    tpu.vector_store %arg8[%c7, %c0_45, %c0_46], %94 {strides = array<i32>} : memref<13x8x128xbf16, #tpu.memory_space<vmem>>, vector<1x8x128xbf16>,
    %c0_47 = arith.constant 0 : index
    %c7_48 = arith.constant 7 : index
    %95 = vector.load %arg1[%c0_47, %c7_48] : memref<8x8xi32, #tpu.memory_space<vmem>>, vector<8x1xi32>
    %96 = vector.broadcast %95 : vector<8x1xi32> to vector<8x128xi32>
    %97 = arith.cmpi eq, %96, %17 : vector<8x128xi32>
    %98 = arith.extui %97 : vector<8x128xi1> to vector<8x128xi32>
    %99 = arith.sitofp %98 : vector<8x128xi32> to vector<8x128xf32>
    %100 = arith.truncf %99 : vector<8x128xf32> to vector<8x128xbf16>
    %cst_49 = arith.constant dense<0.000000e+00> : vector<8x128xf32>
    %101 = tpu.matmul %100, %16, %cst_49 {dimension_numbers = #tpu.dot_dimension_numbers<[1], [0], [0], [1], [0, 0, 1, 1], [], []>} : vector<8x128xbf16>, vector<128x128xbf16>, vector<8x128xf32> -> vector<8x128xf32>
    %102 = arith.truncf %101 : vector<8x128xf32> to vector<8x128xbf16>
    %c8 = arith.constant 8 : index
    %c0_50 = arith.constant 0 : index
    %c0_51 = arith.constant 0 : index
    %103 = vector.load %arg8[%c8, %c0_50, %c0_51] : memref<13x8x128xbf16, #tpu.memory_space<vmem>>, vector<1x8x128xbf16>
    %104 = vector.shape_cast %103 : vector<1x8x128xbf16> to vector<8x128xbf16>
    %105 = vector.shape_cast %102 : vector<8x128xbf16> to vector<1x8x128xbf16>
    tpu.vector_store %arg8[%c8, %c0_50, %c0_51], %105 {strides = array<i32>} : memref<13x8x128xbf16, #tpu.memory_space<vmem>>, vector<1x8x128xbf16>,
    %c0_52 = arith.constant 0 : index
    %c0_53 = arith.constant 0 : index
    %c0_54 = arith.constant 0 : index
    %106 = vector.load %arg8[%c0_52, %c0_53, %c0_54] : memref<13x8x128xbf16, #tpu.memory_space<vmem>>, vector<1x8x128xbf16>
    %107 = vector.shape_cast %106 : vector<1x8x128xbf16> to vector<8x128xbf16>
    %c1_55 = arith.constant 1 : index
    %c0_56 = arith.constant 0 : index
    %c0_57 = arith.constant 0 : index
    %108 = vector.load %arg8[%c1_55, %c0_56, %c0_57] : memref<13x8x128xbf16, #tpu.memory_space<vmem>>, vector<1x8x128xbf16>
    %109 = vector.shape_cast %108 : vector<1x8x128xbf16> to vector<8x128xbf16>
    %110 = tpu.concatenate %107, %109 in 1 : vector<8x128xbf16>, vector<8x128xbf16> -> vector<8x256xbf16>
    %c0_58 = arith.constant 0 : index
    %c0_59 = arith.constant 0 : index
    %c0_60 = arith.constant 0 : index
    %111 = vector.load %arg3[%c0_58, %c0_59, %c0_60] : memref<3x256x128xbf16, #tpu.memory_space<vmem>>, vector<1x256x128xbf16>
    %112 = vector.shape_cast %111 : vector<1x256x128xbf16> to vector<256x128xbf16>
    %cst_61 = arith.constant dense<0.000000e+00> : vector<8x128xf32>
    %113 = tpu.matmul %110, %112, %cst_61 {dimension_numbers = #tpu.dot_dimension_numbers<[1], [0], [0], [1], [0, 0, 1, 1], [], []>} : vector<8x256xbf16>, vector<256x128xbf16>, vector<8x128xf32> -> vector<8x128xf32>
    %c2_62 = arith.constant 2 : index
    %c0_63 = arith.constant 0 : index
    %c0_64 = arith.constant 0 : index
    %114 = vector.load %arg8[%c2_62, %c0_63, %c0_64] : memref<13x8x128xbf16, #tpu.memory_space<vmem>>, vector<1x8x128xbf16>
    %115 = vector.shape_cast %114 : vector<1x8x128xbf16> to vector<8x128xbf16>
    %c3_65 = arith.constant 3 : index
    %c0_66 = arith.constant 0 : index
    %c0_67 = arith.constant 0 : index
    %116 = vector.load %arg8[%c3_65, %c0_66, %c0_67] : memref<13x8x128xbf16, #tpu.memory_space<vmem>>, vector<1x8x128xbf16>
    %117 = vector.shape_cast %116 : vector<1x8x128xbf16> to vector<8x128xbf16>
    %118 = tpu.concatenate %115, %117 in 1 : vector<8x128xbf16>, vector<8x128xbf16> -> vector<8x256xbf16>
    %c1_68 = arith.constant 1 : index
    %c0_69 = arith.constant 0 : index
    %c0_70 = arith.constant 0 : index
    %119 = vector.load %arg3[%c1_68, %c0_69, %c0_70] : memref<3x256x128xbf16, #tpu.memory_space<vmem>>, vector<1x256x128xbf16>
    %120 = vector.shape_cast %119 : vector<1x256x128xbf16> to vector<256x128xbf16>
    %cst_71 = arith.constant dense<0.000000e+00> : vector<8x128xf32>
    %121 = tpu.matmul %118, %120, %cst_71 {dimension_numbers = #tpu.dot_dimension_numbers<[1], [0], [0], [1], [0, 0, 1, 1], [], []>} : vector<8x256xbf16>, vector<256x128xbf16>, vector<8x128xf32> -> vector<8x128xf32>
    %122 = arith.addf %113, %121 : vector<8x128xf32>
    %c4_72 = arith.constant 4 : index
    %c0_73 = arith.constant 0 : index
    %c0_74 = arith.constant 0 : index
    %123 = vector.load %arg8[%c4_72, %c0_73, %c0_74] : memref<13x8x128xbf16, #tpu.memory_space<vmem>>, vector<1x8x128xbf16>
    %124 = vector.shape_cast %123 : vector<1x8x128xbf16> to vector<8x128xbf16>
    %c5_75 = arith.constant 5 : index
    %c0_76 = arith.constant 0 : index
    %c0_77 = arith.constant 0 : index
    %125 = vector.load %arg8[%c5_75, %c0_76, %c0_77] : memref<13x8x128xbf16, #tpu.memory_space<vmem>>, vector<1x8x128xbf16>
    %126 = vector.shape_cast %125 : vector<1x8x128xbf16> to vector<8x128xbf16>
    %127 = tpu.concatenate %124, %126 in 1 : vector<8x128xbf16>, vector<8x128xbf16> -> vector<8x256xbf16>
    %c2_78 = arith.constant 2 : index
    %c0_79 = arith.constant 0 : index
    %c0_80 = arith.constant 0 : index
    %128 = vector.load %arg3[%c2_78, %c0_79, %c0_80] : memref<3x256x128xbf16, #tpu.memory_space<vmem>>, vector<1x256x128xbf16>
    %129 = vector.shape_cast %128 : vector<1x256x128xbf16> to vector<256x128xbf16>
    %cst_81 = arith.constant dense<0.000000e+00> : vector<8x128xf32>
    %130 = tpu.matmul %127, %129, %cst_81 {dimension_numbers = #tpu.dot_dimension_numbers<[1], [0], [0], [1], [0, 0, 1, 1], [], []>} : vector<8x256xbf16>, vector<256x128xbf16>, vector<8x128xf32> -> vector<8x128xf32>
    %131 = arith.addf %122, %130 : vector<8x128xf32>
    %c1_82 = arith.constant 1 : index
    %c0_83 = arith.constant 0 : index
    %c0_84 = arith.constant 0 : index
    %132 = vector.load %arg8[%c1_82, %c0_83, %c0_84] : memref<13x8x128xbf16, #tpu.memory_space<vmem>>, vector<1x8x128xbf16>
    %133 = vector.shape_cast %132 : vector<1x8x128xbf16> to vector<8x128xbf16>
    %c2_85 = arith.constant 2 : index
    %c0_86 = arith.constant 0 : index
    %c0_87 = arith.constant 0 : index
    %134 = vector.load %arg8[%c2_85, %c0_86, %c0_87] : memref<13x8x128xbf16, #tpu.memory_space<vmem>>, vector<1x8x128xbf16>
    %135 = vector.shape_cast %134 : vector<1x8x128xbf16> to vector<8x128xbf16>
    %136 = tpu.concatenate %133, %135 in 1 : vector<8x128xbf16>, vector<8x128xbf16> -> vector<8x256xbf16>
    %c0_88 = arith.constant 0 : index
    %c0_89 = arith.constant 0 : index
    %c0_90 = arith.constant 0 : index
    %137 = vector.load %arg3[%c0_88, %c0_89, %c0_90] : memref<3x256x128xbf16, #tpu.memory_space<vmem>>, vector<1x256x128xbf16>
    %138 = vector.shape_cast %137 : vector<1x256x128xbf16> to vector<256x128xbf16>
    %cst_91 = arith.constant dense<0.000000e+00> : vector<8x128xf32>
    %139 = tpu.matmul %136, %138, %cst_91 {dimension_numbers = #tpu.dot_dimension_numbers<[1], [0], [0], [1], [0, 0, 1, 1], [], []>} : vector<8x256xbf16>, vector<256x128xbf16>, vector<8x128xf32> -> vector<8x128xf32>
    %c3_92 = arith.constant 3 : index
    %c0_93 = arith.constant 0 : index
    %c0_94 = arith.constant 0 : index
    %140 = vector.load %arg8[%c3_92, %c0_93, %c0_94] : memref<13x8x128xbf16, #tpu.memory_space<vmem>>, vector<1x8x128xbf16>
    %141 = vector.shape_cast %140 : vector<1x8x128xbf16> to vector<8x128xbf16>
    %c4_95 = arith.constant 4 : index
    %c0_96 = arith.constant 0 : index
    %c0_97 = arith.constant 0 : index
    %142 = vector.load %arg8[%c4_95, %c0_96, %c0_97] : memref<13x8x128xbf16, #tpu.memory_space<vmem>>, vector<1x8x128xbf16>
    %143 = vector.shape_cast %142 : vector<1x8x128xbf16> to vector<8x128xbf16>
    %144 = tpu.concatenate %141, %143 in 1 : vector<8x128xbf16>, vector<8x128xbf16> -> vector<8x256xbf16>
    %c1_98 = arith.constant 1 : index
    %c0_99 = arith.constant 0 : index
    %c0_100 = arith.constant 0 : index
    %145 = vector.load %arg3[%c1_98, %c0_99, %c0_100] : memref<3x256x128xbf16, #tpu.memory_space<vmem>>, vector<1x256x128xbf16>
    %146 = vector.shape_cast %145 : vector<1x256x128xbf16> to vector<256x128xbf16>
    %cst_101 = arith.constant dense<0.000000e+00> : vector<8x128xf32>
    %147 = tpu.matmul %144, %146, %cst_101 {dimension_numbers = #tpu.dot_dimension_numbers<[1], [0], [0], [1], [0, 0, 1, 1], [], []>} : vector<8x256xbf16>, vector<256x128xbf16>, vector<8x128xf32> -> vector<8x128xf32>
    %148 = arith.addf %139, %147 : vector<8x128xf32>
    %c5_102 = arith.constant 5 : index
    %c0_103 = arith.constant 0 : index
    %c0_104 = arith.constant 0 : index
    %149 = vector.load %arg8[%c5_102, %c0_103, %c0_104] : memref<13x8x128xbf16, #tpu.memory_space<vmem>>, vector<1x8x128xbf16>
    %150 = vector.shape_cast %149 : vector<1x8x128xbf16> to vector<8x128xbf16>
    %c6_105 = arith.constant 6 : index
    %c0_106 = arith.constant 0 : index
    %c0_107 = arith.constant 0 : index
    %151 = vector.load %arg8[%c6_105, %c0_106, %c0_107] : memref<13x8x128xbf16, #tpu.memory_space<vmem>>, vector<1x8x128xbf16>
    %152 = vector.shape_cast %151 : vector<1x8x128xbf16> to vector<8x128xbf16>
    %153 = tpu.concatenate %150, %152 in 1 : vector<8x128xbf16>, vector<8x128xbf16> -> vector<8x256xbf16>
    %c2_108 = arith.constant 2 : index
    %c0_109 = arith.constant 0 : index
    %c0_110 = arith.constant 0 : index
    %154 = vector.load %arg3[%c2_108, %c0_109, %c0_110] : memref<3x256x128xbf16, #tpu.memory_space<vmem>>, vector<1x256x128xbf16>
    %155 = vector.shape_cast %154 : vector<1x256x128xbf16> to vector<256x128xbf16>
    %cst_111 = arith.constant dense<0.000000e+00> : vector<8x128xf32>
    %156 = tpu.matmul %153, %155, %cst_111 {dimension_numbers = #tpu.dot_dimension_numbers<[1], [0], [0], [1], [0, 0, 1, 1], [], []>} : vector<8x256xbf16>, vector<256x128xbf16>, vector<8x128xf32> -> vector<8x128xf32>
    %157 = arith.addf %148, %156 : vector<8x128xf32>
    %158 = arith.maximumf %131, %157 : vector<8x128xf32>
    %c2_112 = arith.constant 2 : index
    %c0_113 = arith.constant 0 : index
    %c0_114 = arith.constant 0 : index
    %159 = vector.load %arg8[%c2_112, %c0_113, %c0_114] : memref<13x8x128xbf16, #tpu.memory_space<vmem>>, vector<1x8x128xbf16>
    %160 = vector.shape_cast %159 : vector<1x8x128xbf16> to vector<8x128xbf16>
    %c3_115 = arith.constant 3 : index
    %c0_116 = arith.constant 0 : index
    %c0_117 = arith.constant 0 : index
    %161 = vector.load %arg8[%c3_115, %c0_116, %c0_117] : memref<13x8x128xbf16, #tpu.memory_space<vmem>>, vector<1x8x128xbf16>
    %162 = vector.shape_cast %161 : vector<1x8x128xbf16> to vector<8x128xbf16>
    %163 = tpu.concatenate %160, %162 in 1 : vector<8x128xbf16>, vector<8x128xbf16> -> vector<8x256xbf16>
    %c0_118 = arith.constant 0 : index
    %c0_119 = arith.constant 0 : index
    %c0_120 = arith.constant 0 : index
    %164 = vector.load %arg3[%c0_118, %c0_119, %c0_120] : memref<3x256x128xbf16, #tpu.memory_space<vmem>>, vector<1x256x128xbf16>
    %165 = vector.shape_cast %164 : vector<1x256x128xbf16> to vector<256x128xbf16>
    %cst_121 = arith.constant dense<0.000000e+00> : vector<8x128xf32>
    %166 = tpu.matmul %163, %165, %cst_121 {dimension_numbers = #tpu.dot_dimension_numbers<[1], [0], [0], [1], [0, 0, 1, 1], [], []>} : vector<8x256xbf16>, vector<256x128xbf16>, vector<8x128xf32> -> vector<8x128xf32>
    %c4_122 = arith.constant 4 : index
    %c0_123 = arith.constant 0 : index
    %c0_124 = arith.constant 0 : index
    %167 = vector.load %arg8[%c4_122, %c0_123, %c0_124] : memref<13x8x128xbf16, #tpu.memory_space<vmem>>, vector<1x8x128xbf16>
    %168 = vector.shape_cast %167 : vector<1x8x128xbf16> to vector<8x128xbf16>
    %c5_125 = arith.constant 5 : index
    %c0_126 = arith.constant 0 : index
    %c0_127 = arith.constant 0 : index
    %169 = vector.load %arg8[%c5_125, %c0_126, %c0_127] : memref<13x8x128xbf16, #tpu.memory_space<vmem>>, vector<1x8x128xbf16>
    %170 = vector.shape_cast %169 : vector<1x8x128xbf16> to vector<8x128xbf16>
    %171 = tpu.concatenate %168, %170 in 1 : vector<8x128xbf16>, vector<8x128xbf16> -> vector<8x256xbf16>
    %c1_128 = arith.constant 1 : index
    %c0_129 = arith.constant 0 : index
    %c0_130 = arith.constant 0 : index
    %172 = vector.load %arg3[%c1_128, %c0_129, %c0_130] : memref<3x256x128xbf16, #tpu.memory_space<vmem>>, vector<1x256x128xbf16>
    %173 = vector.shape_cast %172 : vector<1x256x128xbf16> to vector<256x128xbf16>
    %cst_131 = arith.constant dense<0.000000e+00> : vector<8x128xf32>
    %174 = tpu.matmul %171, %173, %cst_131 {dimension_numbers = #tpu.dot_dimension_numbers<[1], [0], [0], [1], [0, 0, 1, 1], [], []>} : vector<8x256xbf16>, vector<256x128xbf16>, vector<8x128xf32> -> vector<8x128xf32>
    %175 = arith.addf %166, %174 : vector<8x128xf32>
    %c6_132 = arith.constant 6 : index
    %c0_133 = arith.constant 0 : index
    %c0_134 = arith.constant 0 : index
    %176 = vector.load %arg8[%c6_132, %c0_133, %c0_134] : memref<13x8x128xbf16, #tpu.memory_space<vmem>>, vector<1x8x128xbf16>
    %177 = vector.shape_cast %176 : vector<1x8x128xbf16> to vector<8x128xbf16>
    %c7_135 = arith.constant 7 : index
    %c0_136 = arith.constant 0 : index
    %c0_137 = arith.constant 0 : index
    %178 = vector.load %arg8[%c7_135, %c0_136, %c0_137] : memref<13x8x128xbf16, #tpu.memory_space<vmem>>, vector<1x8x128xbf16>
    %179 = vector.shape_cast %178 : vector<1x8x128xbf16> to vector<8x128xbf16>
    %180 = tpu.concatenate %177, %179 in 1 : vector<8x128xbf16>, vector<8x128xbf16> -> vector<8x256xbf16>
    %c2_138 = arith.constant 2 : index
    %c0_139 = arith.constant 0 : index
    %c0_140 = arith.constant 0 : index
    %181 = vector.load %arg3[%c2_138, %c0_139, %c0_140] : memref<3x256x128xbf16, #tpu.memory_space<vmem>>, vector<1x256x128xbf16>
    %182 = vector.shape_cast %181 : vector<1x256x128xbf16> to vector<256x128xbf16>
    %cst_141 = arith.constant dense<0.000000e+00> : vector<8x128xf32>
    %183 = tpu.matmul %180, %182, %cst_141 {dimension_numbers = #tpu.dot_dimension_numbers<[1], [0], [0], [1], [0, 0, 1, 1], [], []>} : vector<8x256xbf16>, vector<256x128xbf16>, vector<8x128xf32> -> vector<8x128xf32>
    %184 = arith.addf %175, %183 : vector<8x128xf32>
    %185 = arith.maximumf %158, %184 : vector<8x128xf32>
    %c3_142 = arith.constant 3 : index
    %c0_143 = arith.constant 0 : index
    %c0_144 = arith.constant 0 : index
    %186 = vector.load %arg8[%c3_142, %c0_143, %c0_144] : memref<13x8x128xbf16, #tpu.memory_space<vmem>>, vector<1x8x128xbf16>
    %187 = vector.shape_cast %186 : vector<1x8x128xbf16> to vector<8x128xbf16>
    %c4_145 = arith.constant 4 : index
    %c0_146 = arith.constant 0 : index
    %c0_147 = arith.constant 0 : index
    %188 = vector.load %arg8[%c4_145, %c0_146, %c0_147] : memref<13x8x128xbf16, #tpu.memory_space<vmem>>, vector<1x8x128xbf16>
    %189 = vector.shape_cast %188 : vector<1x8x128xbf16> to vector<8x128xbf16>
    %190 = tpu.concatenate %187, %189 in 1 : vector<8x128xbf16>, vector<8x128xbf16> -> vector<8x256xbf16>
    %c0_148 = arith.constant 0 : index
    %c0_149 = arith.constant 0 : index
    %c0_150 = arith.constant 0 : index
    %191 = vector.load %arg3[%c0_148, %c0_149, %c0_150] : memref<3x256x128xbf16, #tpu.memory_space<vmem>>, vector<1x256x128xbf16>
    %192 = vector.shape_cast %191 : vector<1x256x128xbf16> to vector<256x128xbf16>
    %cst_151 = arith.constant dense<0.000000e+00> : vector<8x128xf32>
    %193 = tpu.matmul %190, %192, %cst_151 {dimension_numbers = #tpu.dot_dimension_numbers<[1], [0], [0], [1], [0, 0, 1, 1], [], []>} : vector<8x256xbf16>, vector<256x128xbf16>, vector<8x128xf32> -> vector<8x128xf32>
    %c5_152 = arith.constant 5 : index
    %c0_153 = arith.constant 0 : index
    %c0_154 = arith.constant 0 : index
    %194 = vector.load %arg8[%c5_152, %c0_153, %c0_154] : memref<13x8x128xbf16, #tpu.memory_space<vmem>>, vector<1x8x128xbf16>
    %195 = vector.shape_cast %194 : vector<1x8x128xbf16> to vector<8x128xbf16>
    %c6_155 = arith.constant 6 : index
    %c0_156 = arith.constant 0 : index
    %c0_157 = arith.constant 0 : index
    %196 = vector.load %arg8[%c6_155, %c0_156, %c0_157] : memref<13x8x128xbf16, #tpu.memory_space<vmem>>, vector<1x8x128xbf16>
    %197 = vector.shape_cast %196 : vector<1x8x128xbf16> to vector<8x128xbf16>
    %198 = tpu.concatenate %195, %197 in 1 : vector<8x128xbf16>, vector<8x128xbf16> -> vector<8x256xbf16>
    %c1_158 = arith.constant 1 : index
    %c0_159 = arith.constant 0 : index
    %c0_160 = arith.constant 0 : index
    %199 = vector.load %arg3[%c1_158, %c0_159, %c0_160] : memref<3x256x128xbf16, #tpu.memory_space<vmem>>, vector<1x256x128xbf16>
    %200 = vector.shape_cast %199 : vector<1x256x128xbf16> to vector<256x128xbf16>
    %cst_161 = arith.constant dense<0.000000e+00> : vector<8x128xf32>
    %201 = tpu.matmul %198, %200, %cst_161 {dimension_numbers = #tpu.dot_dimension_numbers<[1], [0], [0], [1], [0, 0, 1, 1], [], []>} : vector<8x256xbf16>, vector<256x128xbf16>, vector<8x128xf32> -> vector<8x128xf32>
    %202 = arith.addf %193, %201 : vector<8x128xf32>
    %c7_162 = arith.constant 7 : index
    %c0_163 = arith.constant 0 : index
    %c0_164 = arith.constant 0 : index
    %203 = vector.load %arg8[%c7_162, %c0_163, %c0_164] : memref<13x8x128xbf16, #tpu.memory_space<vmem>>, vector<1x8x128xbf16>
    %204 = vector.shape_cast %203 : vector<1x8x128xbf16> to vector<8x128xbf16>
    %c8_165 = arith.constant 8 : index
    %c0_166 = arith.constant 0 : index
    %c0_167 = arith.constant 0 : index
    %205 = vector.load %arg8[%c8_165, %c0_166, %c0_167] : memref<13x8x128xbf16, #tpu.memory_space<vmem>>, vector<1x8x128xbf16>
    %206 = vector.shape_cast %205 : vector<1x8x128xbf16> to vector<8x128xbf16>
    %207 = tpu.concatenate %204, %206 in 1 : vector<8x128xbf16>, vector<8x128xbf16> -> vector<8x256xbf16>
    %c2_168 = arith.constant 2 : index
    %c0_169 = arith.constant 0 : index
    %c0_170 = arith.constant 0 : index
    %208 = vector.load %arg3[%c2_168, %c0_169, %c0_170] : memref<3x256x128xbf16, #tpu.memory_space<vmem>>, vector<1x256x128xbf16>
    %209 = vector.shape_cast %208 : vector<1x256x128xbf16> to vector<256x128xbf16>
    %cst_171 = arith.constant dense<0.000000e+00> : vector<8x128xf32>
    %210 = tpu.matmul %207, %209, %cst_171 {dimension_numbers = #tpu.dot_dimension_numbers<[1], [0], [0], [1], [0, 0, 1, 1], [], []>} : vector<8x256xbf16>, vector<256x128xbf16>, vector<8x128xf32> -> vector<8x128xf32>
    %211 = arith.addf %202, %210 : vector<8x128xf32>
    %212 = arith.maximumf %185, %211 : vector<8x128xf32>
    %c4_172 = arith.constant 4 : index
    %c0_173 = arith.constant 0 : index
    %c0_174 = arith.constant 0 : index
    %213 = vector.load %arg8[%c4_172, %c0_173, %c0_174] : memref<13x8x128xbf16, #tpu.memory_space<vmem>>, vector<1x8x128xbf16>
    %214 = vector.shape_cast %213 : vector<1x8x128xbf16> to vector<8x128xbf16>
    %c5_175 = arith.constant 5 : index
    %c0_176 = arith.constant 0 : index
    %c0_177 = arith.constant 0 : index
    %215 = vector.load %arg8[%c5_175, %c0_176, %c0_177] : memref<13x8x128xbf16, #tpu.memory_space<vmem>>, vector<1x8x128xbf16>
    %216 = vector.shape_cast %215 : vector<1x8x128xbf16> to vector<8x128xbf16>
    %217 = tpu.concatenate %214, %216 in 1 : vector<8x128xbf16>, vector<8x128xbf16> -> vector<8x256xbf16>
    %c0_178 = arith.constant 0 : index
    %c0_179 = arith.constant 0 : index
    %c0_180 = arith.constant 0 : index
    %218 = vector.load %arg3[%c0_178, %c0_179, %c0_180] : memref<3x256x128xbf16, #tpu.memory_space<vmem>>, vector<1x256x128xbf16>
    %219 = vector.shape_cast %218 : vector<1x256x128xbf16> to vector<256x128xbf16>
    %cst_181 = arith.constant dense<0.000000e+00> : vector<8x128xf32>
    %220 = tpu.matmul %217, %219, %cst_181 {dimension_numbers = #tpu.dot_dimension_numbers<[1], [0], [0], [1], [0, 0, 1, 1], [], []>} : vector<8x256xbf16>, vector<256x128xbf16>, vector<8x128xf32> -> vector<8x128xf32>
    %c6_182 = arith.constant 6 : index
    %c0_183 = arith.constant 0 : index
    %c0_184 = arith.constant 0 : index
    %221 = vector.load %arg8[%c6_182, %c0_183, %c0_184] : memref<13x8x128xbf16, #tpu.memory_space<vmem>>, vector<1x8x128xbf16>
    %222 = vector.shape_cast %221 : vector<1x8x128xbf16> to vector<8x128xbf16>
    %c7_185 = arith.constant 7 : index
    %c0_186 = arith.constant 0 : index
    %c0_187 = arith.constant 0 : index
    %223 = vector.load %arg8[%c7_185, %c0_186, %c0_187] : memref<13x8x128xbf16, #tpu.memory_space<vmem>>, vector<1x8x128xbf16>
    %224 = vector.shape_cast %223 : vector<1x8x128xbf16> to vector<8x128xbf16>
    %225 = tpu.concatenate %222, %224 in 1 : vector<8x128xbf16>, vector<8x128xbf16> -> vector<8x256xbf16>
    %c1_188 = arith.constant 1 : index
    %c0_189 = arith.constant 0 : index
    %c0_190 = arith.constant 0 : index
    %226 = vector.load %arg3[%c1_188, %c0_189, %c0_190] : memref<3x256x128xbf16, #tpu.memory_space<vmem>>, vector<1x256x128xbf16>
    %227 = vector.shape_cast %226 : vector<1x256x128xbf16> to vector<256x128xbf16>
    %cst_191 = arith.constant dense<0.000000e+00> : vector<8x128xf32>
    %228 = tpu.matmul %225, %227, %cst_191 {dimension_numbers = #tpu.dot_dimension_numbers<[1], [0], [0], [1], [0, 0, 1, 1], [], []>} : vector<8x256xbf16>, vector<256x128xbf16>, vector<8x128xf32> -> vector<8x128xf32>
    %229 = arith.addf %220, %228 : vector<8x128xf32>
    %c8_192 = arith.constant 8 : index
    %c0_193 = arith.constant 0 : index
    %c0_194 = arith.constant 0 : index
    %230 = vector.load %arg8[%c8_192, %c0_193, %c0_194] : memref<13x8x128xbf16, #tpu.memory_space<vmem>>, vector<1x8x128xbf16>
    %231 = vector.shape_cast %230 : vector<1x8x128xbf16> to vector<8x128xbf16>
    %c9_195 = arith.constant 9 : index
    %c0_196 = arith.constant 0 : index
    %c0_197 = arith.constant 0 : index
    %232 = vector.load %arg8[%c9_195, %c0_196, %c0_197] : memref<13x8x128xbf16, #tpu.memory_space<vmem>>, vector<1x8x128xbf16>
    %233 = vector.shape_cast %232 : vector<1x8x128xbf16> to vector<8x128xbf16>
    %234 = tpu.concatenate %231, %233 in 1 : vector<8x128xbf16>, vector<8x128xbf16> -> vector<8x256xbf16>
    %c2_198 = arith.constant 2 : index
    %c0_199 = arith.constant 0 : index
    %c0_200 = arith.constant 0 : index
    %235 = vector.load %arg3[%c2_198, %c0_199, %c0_200] : memref<3x256x128xbf16, #tpu.memory_space<vmem>>, vector<1x256x128xbf16>
    %236 = vector.shape_cast %235 : vector<1x256x128xbf16> to vector<256x128xbf16>
    %cst_201 = arith.constant dense<0.000000e+00> : vector<8x128xf32>
    %237 = tpu.matmul %234, %236, %cst_201 {dimension_numbers = #tpu.dot_dimension_numbers<[1], [0], [0], [1], [0, 0, 1, 1], [], []>} : vector<8x256xbf16>, vector<256x128xbf16>, vector<8x128xf32> -> vector<8x128xf32>
    %238 = arith.addf %229, %237 : vector<8x128xf32>
    %239 = arith.maximumf %212, %238 : vector<8x128xf32>
    %c5_202 = arith.constant 5 : index
    %c0_203 = arith.constant 0 : index
    %c0_204 = arith.constant 0 : index
    %240 = vector.load %arg8[%c5_202, %c0_203, %c0_204] : memref<13x8x128xbf16, #tpu.memory_space<vmem>>, vector<1x8x128xbf16>
    %241 = vector.shape_cast %240 : vector<1x8x128xbf16> to vector<8x128xbf16>
    %c6_205 = arith.constant 6 : index
    %c0_206 = arith.constant 0 : index
    %c0_207 = arith.constant 0 : index
    %242 = vector.load %arg8[%c6_205, %c0_206, %c0_207] : memref<13x8x128xbf16, #tpu.memory_space<vmem>>, vector<1x8x128xbf16>
    %243 = vector.shape_cast %242 : vector<1x8x128xbf16> to vector<8x128xbf16>
    %244 = tpu.concatenate %241, %243 in 1 : vector<8x128xbf16>, vector<8x128xbf16> -> vector<8x256xbf16>
    %c0_208 = arith.constant 0 : index
    %c0_209 = arith.constant 0 : index
    %c0_210 = arith.constant 0 : index
    %245 = vector.load %arg3[%c0_208, %c0_209, %c0_210] : memref<3x256x128xbf16, #tpu.memory_space<vmem>>, vector<1x256x128xbf16>
    %246 = vector.shape_cast %245 : vector<1x256x128xbf16> to vector<256x128xbf16>
    %cst_211 = arith.constant dense<0.000000e+00> : vector<8x128xf32>
    %247 = tpu.matmul %244, %246, %cst_211 {dimension_numbers = #tpu.dot_dimension_numbers<[1], [0], [0], [1], [0, 0, 1, 1], [], []>} : vector<8x256xbf16>, vector<256x128xbf16>, vector<8x128xf32> -> vector<8x128xf32>
    %c7_212 = arith.constant 7 : index
    %c0_213 = arith.constant 0 : index
    %c0_214 = arith.constant 0 : index
    %248 = vector.load %arg8[%c7_212, %c0_213, %c0_214] : memref<13x8x128xbf16, #tpu.memory_space<vmem>>, vector<1x8x128xbf16>
    %249 = vector.shape_cast %248 : vector<1x8x128xbf16> to vector<8x128xbf16>
    %c8_215 = arith.constant 8 : index
    %c0_216 = arith.constant 0 : index
    %c0_217 = arith.constant 0 : index
    %250 = vector.load %arg8[%c8_215, %c0_216, %c0_217] : memref<13x8x128xbf16, #tpu.memory_space<vmem>>, vector<1x8x128xbf16>
    %251 = vector.shape_cast %250 : vector<1x8x128xbf16> to vector<8x128xbf16>
    %252 = tpu.concatenate %249, %251 in 1 : vector<8x128xbf16>, vector<8x128xbf16> -> vector<8x256xbf16>
    %c1_218 = arith.constant 1 : index
    %c0_219 = arith.constant 0 : index
    %c0_220 = arith.constant 0 : index
    %253 = vector.load %arg3[%c1_218, %c0_219, %c0_220] : memref<3x256x128xbf16, #tpu.memory_space<vmem>>, vector<1x256x128xbf16>
    %254 = vector.shape_cast %253 : vector<1x256x128xbf16> to vector<256x128xbf16>
    %cst_221 = arith.constant dense<0.000000e+00> : vector<8x128xf32>
    %255 = tpu.matmul %252, %254, %cst_221 {dimension_numbers = #tpu.dot_dimension_numbers<[1], [0], [0], [1], [0, 0, 1, 1], [], []>} : vector<8x256xbf16>, vector<256x128xbf16>, vector<8x128xf32> -> vector<8x128xf32>
    %256 = arith.addf %247, %255 : vector<8x128xf32>
    %c9_222 = arith.constant 9 : index
    %c0_223 = arith.constant 0 : index
    %c0_224 = arith.constant 0 : index
    %257 = vector.load %arg8[%c9_222, %c0_223, %c0_224] : memref<13x8x128xbf16, #tpu.memory_space<vmem>>, vector<1x8x128xbf16>
    %258 = vector.shape_cast %257 : vector<1x8x128xbf16> to vector<8x128xbf16>
    %c10_225 = arith.constant 10 : index
    %c0_226 = arith.constant 0 : index
    %c0_227 = arith.constant 0 : index
    %259 = vector.load %arg8[%c10_225, %c0_226, %c0_227] : memref<13x8x128xbf16, #tpu.memory_space<vmem>>, vector<1x8x128xbf16>
    %260 = vector.shape_cast %259 : vector<1x8x128xbf16> to vector<8x128xbf16>
    %261 = tpu.concatenate %258, %260 in 1 : vector<8x128xbf16>, vector<8x128xbf16> -> vector<8x256xbf16>
    %c2_228 = arith.constant 2 : index
    %c0_229 = arith.constant 0 : index
    %c0_230 = arith.constant 0 : index
    %262 = vector.load %arg3[%c2_228, %c0_229, %c0_230] : memref<3x256x128xbf16, #tpu.memory_space<vmem>>, vector<1x256x128xbf16>
    %263 = vector.shape_cast %262 : vector<1x256x128xbf16> to vector<256x128xbf16>
    %cst_231 = arith.constant dense<0.000000e+00> : vector<8x128xf32>
    %264 = tpu.matmul %261, %263, %cst_231 {dimension_numbers = #tpu.dot_dimension_numbers<[1], [0], [0], [1], [0, 0, 1, 1], [], []>} : vector<8x256xbf16>, vector<256x128xbf16>, vector<8x128xf32> -> vector<8x128xf32>
    %265 = arith.addf %256, %264 : vector<8x128xf32>
    %266 = arith.maximumf %239, %265 : vector<8x128xf32>
    %c0_232 = arith.constant 0 : index
    %c0_233 = arith.constant 0 : index
    %267 = vector.load %arg10[%c0_232, %c0_233] : memref<8x128xf32, #tpu.memory_space<vmem>>, vector<8x128xf32>
    tpu.vector_store %arg10[%c0_232, %c0_233], %266 {strides = array<i32>} : memref<8x128xf32, #tpu.memory_space<vmem>>, vector<8x128xf32>,
    %c6_234 = arith.constant 6 : index
    %c0_235 = arith.constant 0 : index
    %c0_236 = arith.constant 0 : index
    %268 = vector.load %arg8[%c6_234, %c0_235, %c0_236] : memref<13x8x128xbf16, #tpu.memory_space<vmem>>, vector<1x8x128xbf16>
    %269 = vector.shape_cast %268 : vector<1x8x128xbf16> to vector<8x128xbf16>
    %c7_237 = arith.constant 7 : index
    %c0_238 = arith.constant 0 : index
    %c0_239 = arith.constant 0 : index
    %270 = vector.load %arg8[%c7_237, %c0_238, %c0_239] : memref<13x8x128xbf16, #tpu.memory_space<vmem>>, vector<1x8x128xbf16>
    %271 = vector.shape_cast %270 : vector<1x8x128xbf16> to vector<8x128xbf16>
    %272 = tpu.concatenate %269, %271 in 1 : vector<8x128xbf16>, vector<8x128xbf16> -> vector<8x256xbf16>
    %c0_240 = arith.constant 0 : index
    %c0_241 = arith.constant 0 : index
    %c0_242 = arith.constant 0 : index
    %273 = vector.load %arg3[%c0_240, %c0_241, %c0_242] : memref<3x256x128xbf16, #tpu.memory_space<vmem>>, vector<1x256x128xbf16>
    %274 = vector.shape_cast %273 : vector<1x256x128xbf16> to vector<256x128xbf16>
    %cst_243 = arith.constant dense<0.000000e+00> : vector<8x128xf32>
    %275 = tpu.matmul %272, %274, %cst_243 {dimension_numbers = #tpu.dot_dimension_numbers<[1], [0], [0], [1], [0, 0, 1, 1], [], []>} : vector<8x256xbf16>, vector<256x128xbf16>, vector<8x128xf32> -> vector<8x128xf32>
    %c8_244 = arith.constant 8 : index
    %c0_245 = arith.constant 0 : index
    %c0_246 = arith.constant 0 : index
    %276 = vector.load %arg8[%c8_244, %c0_245, %c0_246] : memref<13x8x128xbf16, #tpu.memory_space<vmem>>, vector<1x8x128xbf16>
    %277 = vector.shape_cast %276 : vector<1x8x128xbf16> to vector<8x128xbf16>
    %c9_247 = arith.constant 9 : index
    %c0_248 = arith.constant 0 : index
    %c0_249 = arith.constant 0 : index
    %278 = vector.load %arg8[%c9_247, %c0_248, %c0_249] : memref<13x8x128xbf16, #tpu.memory_space<vmem>>, vector<1x8x128xbf16>
    %279 = vector.shape_cast %278 : vector<1x8x128xbf16> to vector<8x128xbf16>
    %280 = tpu.concatenate %277, %279 in 1 : vector<8x128xbf16>, vector<8x128xbf16> -> vector<8x256xbf16>
    %c1_250 = arith.constant 1 : index
    %c0_251 = arith.constant 0 : index
    %c0_252 = arith.constant 0 : index
    %281 = vector.load %arg3[%c1_250, %c0_251, %c0_252] : memref<3x256x128xbf16, #tpu.memory_space<vmem>>, vector<1x256x128xbf16>
    %282 = vector.shape_cast %281 : vector<1x256x128xbf16> to vector<256x128xbf16>
    %cst_253 = arith.constant dense<0.000000e+00> : vector<8x128xf32>
    %283 = tpu.matmul %280, %282, %cst_253 {dimension_numbers = #tpu.dot_dimension_numbers<[1], [0], [0], [1], [0, 0, 1, 1], [], []>} : vector<8x256xbf16>, vector<256x128xbf16>, vector<8x128xf32> -> vector<8x128xf32>
    %284 = arith.addf %275, %283 : vector<8x128xf32>
    %c10_254 = arith.constant 10 : index
    %c0_255 = arith.constant 0 : index
    %c0_256 = arith.constant 0 : index
    %285 = vector.load %arg8[%c10_254, %c0_255, %c0_256] : memref<13x8x128xbf16, #tpu.memory_space<vmem>>, vector<1x8x128xbf16>
    %286 = vector.shape_cast %285 : vector<1x8x128xbf16> to vector<8x128xbf16>
    %c11_257 = arith.constant 11 : index
    %c0_258 = arith.constant 0 : index
    %c0_259 = arith.constant 0 : index
    %287 = vector.load %arg8[%c11_257, %c0_258, %c0_259] : memref<13x8x128xbf16, #tpu.memory_space<vmem>>, vector<1x8x128xbf16>
    %288 = vector.shape_cast %287 : vector<1x8x128xbf16> to vector<8x128xbf16>
    %289 = tpu.concatenate %286, %288 in 1 : vector<8x128xbf16>, vector<8x128xbf16> -> vector<8x256xbf16>
    %c2_260 = arith.constant 2 : index
    %c0_261 = arith.constant 0 : index
    %c0_262 = arith.constant 0 : index
    %290 = vector.load %arg3[%c2_260, %c0_261, %c0_262] : memref<3x256x128xbf16, #tpu.memory_space<vmem>>, vector<1x256x128xbf16>
    %291 = vector.shape_cast %290 : vector<1x256x128xbf16> to vector<256x128xbf16>
    %cst_263 = arith.constant dense<0.000000e+00> : vector<8x128xf32>
    %292 = tpu.matmul %289, %291, %cst_263 {dimension_numbers = #tpu.dot_dimension_numbers<[1], [0], [0], [1], [0, 0, 1, 1], [], []>} : vector<8x256xbf16>, vector<256x128xbf16>, vector<8x128xf32> -> vector<8x128xf32>
    %293 = arith.addf %284, %292 : vector<8x128xf32>
    %294 = arith.maximumf %266, %293 : vector<8x128xf32>
    %c0_264 = arith.constant 0 : index
    %c0_265 = arith.constant 0 : index
    %295 = vector.load %arg9[%c0_264, %c0_265] : memref<8x128xf32, #tpu.memory_space<vmem>>, vector<8x128xf32>
    tpu.vector_store %arg9[%c0_264, %c0_265], %294 {strides = array<i32>} : memref<8x128xf32, #tpu.memory_space<vmem>>, vector<8x128xf32>,
    %c7_266 = arith.constant 7 : index
    %c0_267 = arith.constant 0 : index
    %c0_268 = arith.constant 0 : index
    %296 = vector.load %arg8[%c7_266, %c0_267, %c0_268] : memref<13x8x128xbf16, #tpu.memory_space<vmem>>, vector<1x8x128xbf16>
    %297 = vector.shape_cast %296 : vector<1x8x128xbf16> to vector<8x128xbf16>
    %c8_269 = arith.constant 8 : index
    %c0_270 = arith.constant 0 : index
    %c0_271 = arith.constant 0 : index
    %298 = vector.load %arg8[%c8_269, %c0_270, %c0_271] : memref<13x8x128xbf16, #tpu.memory_space<vmem>>, vector<1x8x128xbf16>
    %299 = vector.shape_cast %298 : vector<1x8x128xbf16> to vector<8x128xbf16>
    %300 = tpu.concatenate %297, %299 in 1 : vector<8x128xbf16>, vector<8x128xbf16> -> vector<8x256xbf16>
    %c0_272 = arith.constant 0 : index
    %c0_273 = arith.constant 0 : index
    %c0_274 = arith.constant 0 : index
    %301 = vector.load %arg3[%c0_272, %c0_273, %c0_274] : memref<3x256x128xbf16, #tpu.memory_space<vmem>>, vector<1x256x128xbf16>
    %302 = vector.shape_cast %301 : vector<1x256x128xbf16> to vector<256x128xbf16>
    %cst_275 = arith.constant dense<0.000000e+00> : vector<8x128xf32>
    %303 = tpu.matmul %300, %302, %cst_275 {dimension_numbers = #tpu.dot_dimension_numbers<[1], [0], [0], [1], [0, 0, 1, 1], [], []>} : vector<8x256xbf16>, vector<256x128xbf16>, vector<8x128xf32> -> vector<8x128xf32>
    %c9_276 = arith.constant 9 : index
    %c0_277 = arith.constant 0 : index
    %c0_278 = arith.constant 0 : index
    %304 = vector.load %arg8[%c9_276, %c0_277, %c0_278] : memref<13x8x128xbf16, #tpu.memory_space<vmem>>, vector<1x8x128xbf16>
    %305 = vector.shape_cast %304 : vector<1x8x128xbf16> to vector<8x128xbf16>
    %c10_279 = arith.constant 10 : index
    %c0_280 = arith.constant 0 : index
    %c0_281 = arith.constant 0 : index
    %306 = vector.load %arg8[%c10_279, %c0_280, %c0_281] : memref<13x8x128xbf16, #tpu.memory_space<vmem>>, vector<1x8x128xbf16>
    %307 = vector.shape_cast %306 : vector<1x8x128xbf16> to vector<8x128xbf16>
    %308 = tpu.concatenate %305, %307 in 1 : vector<8x128xbf16>, vector<8x128xbf16> -> vector<8x256xbf16>
    %c1_282 = arith.constant 1 : index
    %c0_283 = arith.constant 0 : index
    %c0_284 = arith.constant 0 : index
    %309 = vector.load %arg3[%c1_282, %c0_283, %c0_284] : memref<3x256x128xbf16, #tpu.memory_space<vmem>>, vector<1x256x128xbf16>
    %310 = vector.shape_cast %309 : vector<1x256x128xbf16> to vector<256x128xbf16>
    %cst_285 = arith.constant dense<0.000000e+00> : vector<8x128xf32>
    %311 = tpu.matmul %308, %310, %cst_285 {dimension_numbers = #tpu.dot_dimension_numbers<[1], [0], [0], [1], [0, 0, 1, 1], [], []>} : vector<8x256xbf16>, vector<256x128xbf16>, vector<8x128xf32> -> vector<8x128xf32>
    %312 = arith.addf %303, %311 : vector<8x128xf32>
    %c11_286 = arith.constant 11 : index
    %c0_287 = arith.constant 0 : index
    %c0_288 = arith.constant 0 : index
    %313 = vector.load %arg8[%c11_286, %c0_287, %c0_288] : memref<13x8x128xbf16, #tpu.memory_space<vmem>>, vector<1x8x128xbf16>
    %314 = vector.shape_cast %313 : vector<1x8x128xbf16> to vector<8x128xbf16>
    %c12_289 = arith.constant 12 : index
    %c0_290 = arith.constant 0 : index
    %c0_291 = arith.constant 0 : index
    %315 = vector.load %arg8[%c12_289, %c0_290, %c0_291] : memref<13x8x128xbf16, #tpu.memory_space<vmem>>, vector<1x8x128xbf16>
    %316 = vector.shape_cast %315 : vector<1x8x128xbf16> to vector<8x128xbf16>
    %317 = tpu.concatenate %314, %316 in 1 : vector<8x128xbf16>, vector<8x128xbf16> -> vector<8x256xbf16>
    %c2_292 = arith.constant 2 : index
    %c0_293 = arith.constant 0 : index
    %c0_294 = arith.constant 0 : index
    %318 = vector.load %arg3[%c2_292, %c0_293, %c0_294] : memref<3x256x128xbf16, #tpu.memory_space<vmem>>, vector<1x256x128xbf16>
    %319 = vector.shape_cast %318 : vector<1x256x128xbf16> to vector<256x128xbf16>
    %cst_295 = arith.constant dense<0.000000e+00> : vector<8x128xf32>
    %320 = tpu.matmul %317, %319, %cst_295 {dimension_numbers = #tpu.dot_dimension_numbers<[1], [0], [0], [1], [0, 0, 1, 1], [], []>} : vector<8x256xbf16>, vector<256x128xbf16>, vector<8x128xf32> -> vector<8x128xf32>
    %321 = arith.addf %312, %320 : vector<8x128xf32>
    %322 = arith.maximumf %294, %321 : vector<8x128xf32>
    %323 = tpu.iota {dimensions = array<i32: 1>} : vector<8x128xi32>
    %c32_i32 = arith.constant 32 : i32
    %324 = vector.broadcast %c32_i32 : i32 to vector<8x128xi32>
    %325 = arith.cmpi slt, %323, %324 : vector<8x128xi32>
    %c64_i32 = arith.constant 64 : i32
    %326 = vector.broadcast %c64_i32 : i32 to vector<8x128xi32>
    %327 = arith.cmpi slt, %323, %326 : vector<8x128xi32>
    %c0_296 = arith.constant 0 : index
    %c0_297 = arith.constant 0 : index
    %328 = vector.load %arg9[%c0_296, %c0_297] : memref<8x128xf32, #tpu.memory_space<vmem>>, vector<8x128xf32>
    %c0_298 = arith.constant 0 : index
    %c0_299 = arith.constant 0 : index
    %329 = vector.load %arg10[%c0_298, %c0_299] : memref<8x128xf32, #tpu.memory_space<vmem>>, vector<8x128xf32>
    %330 = arith.select %327, %328, %329 : vector<8x128xi1>, vector<8x128xf32>
    %331 = arith.select %325, %322, %330 : vector<8x128xi1>, vector<8x128xf32>
    %c0_300 = arith.constant 0 : index
    %c0_301 = arith.constant 0 : index
    %332 = vector.load %arg4[%c0_300, %c0_301] : memref<1x128xf32, #tpu.memory_space<vmem>>, vector<1x128xf32>
    %333 = vector.broadcast %332 : vector<1x128xf32> to vector<8x128xf32>
    %334 = arith.addf %331, %333 : vector<8x128xf32>
    %cst_302 = arith.constant 0.000000e+00 : f32
    %335 = vector.broadcast %cst_302 : f32 to vector<8x128xf32>
    %336 = arith.maximumf %334, %335 : vector<8x128xf32>
    %337 = arith.truncf %336 : vector<8x128xf32> to vector<8x128xbf16>
    %c0_303 = arith.constant 0 : index
    %c0_304 = arith.constant 0 : index
    %338 = vector.load %arg5[%c0_303, %c0_304] : memref<128x128xbf16, #tpu.memory_space<vmem>>, vector<128x128xbf16>
    %cst_305 = arith.constant dense<0.000000e+00> : vector<8x128xf32>
    %339 = tpu.matmul %337, %338, %cst_305 {dimension_numbers = #tpu.dot_dimension_numbers<[1], [0], [0], [1], [0, 0, 1, 1], [], []>} : vector<8x128xbf16>, vector<128x128xbf16>, vector<8x128xf32> -> vector<8x128xf32>
    %c0_306 = arith.constant 0 : index
    %c0_307 = arith.constant 0 : index
    %340 = vector.load %arg6[%c0_306, %c0_307] : memref<1x128xf32, #tpu.memory_space<vmem>>, vector<1x128xf32>
    %341 = vector.broadcast %340 : vector<1x128xf32> to vector<8x128xf32>
    %342 = arith.addf %339, %341 : vector<8x128xf32>
    %c0_308 = arith.constant 0 : index
    %c0_309 = arith.constant 0 : index
    %343 = vector.load %arg7[%c0_308, %c0_309] : memref<8x128xf32, #tpu.memory_space<vmem>>, vector<8x128xf32>
    tpu.vector_store %arg7[%c0_308, %c0_309], %342 {strides = array<i32>} : memref<8x128xf32, #tpu.memory_space<vmem>>, vector<8x128xf32>,
    return
  }
  func.func @transform_0(%arg0: i32) -> (i32, i32) {
    %c0_i32 = arith.constant 0 : i32
    %c0_i32_0 = arith.constant 0 : i32
    return %arg0, %c0_i32 : i32, i32
  }
  func.func @transform_1(%arg0: i32) -> (i32, i32) {
    %c0_i32 = arith.constant 0 : i32
    %c0_i32_0 = arith.constant 0 : i32
    %c0_i32_1 = arith.constant 0 : i32
    return %c0_i32, %c0_i32_0 : i32, i32
  }
  func.func @transform_2(%arg0: i32) -> (i32, i32, i32) {
    %c0_i32 = arith.constant 0 : i32
    %c0_i32_0 = arith.constant 0 : i32
    %c0_i32_1 = arith.constant 0 : i32
    %c0_i32_2 = arith.constant 0 : i32
    return %c0_i32, %c0_i32_0, %c0_i32_1 : i32, i32, i32
  }
  func.func @transform_3(%arg0: i32) -> (i32, i32) {
    %c0_i32 = arith.constant 0 : i32
    %c0_i32_0 = arith.constant 0 : i32
    %c0_i32_1 = arith.constant 0 : i32
    return %c0_i32, %c0_i32_0 : i32, i32
  }
  func.func @transform_4(%arg0: i32) -> (i32, i32) {
    %c0_i32 = arith.constant 0 : i32
    %c0_i32_0 = arith.constant 0 : i32
    %c0_i32_1 = arith.constant 0 : i32
    return %c0_i32, %c0_i32_0 : i32, i32
  }
  func.func @transform_5(%arg0: i32) -> (i32, i32) {
    %c0_i32 = arith.constant 0 : i32
    %c0_i32_0 = arith.constant 0 : i32
    %c0_i32_1 = arith.constant 0 : i32
    return %c0_i32, %c0_i32_0 : i32, i32
  }
  func.func @transform_6(%arg0: i32) -> (i32, i32) {
    %c0_i32 = arith.constant 0 : i32
    %c0_i32_0 = arith.constant 0 : i32
    return %arg0, %c0_i32 : i32, i32
  }
}

</mosaic_0001>

<bundles_post_ra>
// kernel: tpu_custom_call.1
= control target key start
LH: loop header
LB: loop body
LE: loop exit
PB: predicated region body
PF: predicated region fallthrough
CT: control target
= control target key end

     0   :  { %11 = vsyncpa [#allocation6], 0  ;;  %s5407_s0 = inlined_call_operand.vmem [shape: s32[16,8], index: 0, kind: input, shape index: {}]   ;;  %s5408_s1 = inlined_call_operand.hbm [shape: bf16[128,128], index: 1, kind: input, shape index: {}]   ;;  %s5409_s2 = inlined_call_operand.hbm [shape: bf16[3,256,128], index: 2, kind: input, shape index: {}]   ;;  %s5410_s3 = inlined_call_operand.vmem [shape: f32[1,128], index: 3, kind: input, shape index: {}]   ;;  %s5411_s4 = inlined_call_operand.hbm [shape: bf16[128,128], index: 4, kind: input, shape index: {}]   ;;  %s5412_s5 = inlined_call_operand.vmem [shape: f32[1,128], index: 5, kind: input, shape index: {}]   ;;  %s5413_s6 = inlined_call_operand.hbm [shape: f32[16,128], index: 6, kind: output, shape index: {}]  }
   0x1   :  { %12 = vsyncpa [#allocation9], 0 }
   0x2   :  { %13 = vsyncpa [#allocation7], 0 }
   0x3   :  { %15 = vsyncpa [#allocation7 + $0x1], 0  ;;  %s4604_s21 = smov 0   ;;  %s4606_s22 = smov 0  }
   0x4   :  { %s4608_s23 = smov 0   ;;  %s4610_s24 = smov 0  }
   0x5 LB: > { %s4625_s25 = sadd.s32 4294967295, %s4550_s24   ;;  %s3161_s26 = sadd.s32 4294967294, %s4550_s24   ;;  %s4550_s24 = sphi %s4610_s24, %s5432_s24   ;;  %s4546_s23 = sphi %s4608_s23, %s5431_s23   ;;  %s4542_s22 = sphi %s4606_s22, %s5430_s22   ;;  %s4538_s21 = sphi %s4604_s21, %s5429_s21  }
   0x6   : > { %s4629_s27 = sadd.s32 1, %s4550_s24   ;;  %s159_s28 = sadd.s32 1, %s4546_s23 }
   0x7   : > { %s156_s29 = ssub.s32 %s4550_s24, %s4629_s27  ;;  %p169_p0 = scmp.ne.s32.totalorder %s4546_s23, %s4542_s22 }
   0x8   : > { %p157_p1 = scmp.eq.s32.totalorder %s156_s29, 0  ;;  %p170_p2 = scmp.eq.s32.totalorder %s4625_s25, 1 }
   0x9   : > { %p175_p3 = scmp.ne.s32.totalorder %s4542_s22, %s4538_s21  ;;  %p176_p4 = scmp.eq.s32.totalorder %s3161_s26, 1 }
   0xa   : > { %s4640_s30 = scalar_select %p157_p1, %s4546_s23, %s159_s28  }
   0xb   : > { %p4642_p5 = por %p170_p2, %p169_p0  ;;  %p4646_p6 = por %p176_p4, %p175_p3 }
   0xc   : > { %p3162_p7 = scmp.ge.s32.totalorder %s4550_s24, 1  ;;  %p183_p8 = scmp.lt.s32.totalorder %s4550_s24, 3 }
   0xd   : > { %s5418_s7 = scalar_select %p4642_p5, 1, 0 }
   0xe   : > { %s5419_s8 = scalar_select %p4646_p6, 1, 0 }
   0xf   : > { %p5414_p9 = scmp.eq.s32.totalorder %s4625_s25, 0  ;;  %p4653_p10 = pnand %p3162_p7, %p183_p8 }
  0x10   : > { %s4552_s10 = smov [#allocation8]   ;;  %s4553_s13 = smov [#allocation5]  }
  0x11   : > { %p4166_p11 = pneg %p4653_p10  ;;  %s208_s11 = sshll.u32 %s4552_s10, 4  ;;  %s209_s11 = int_to_ptr.vmem [resolvable:$true] %s208_s11 }
  0x12   : > { %s195_s14 = sshll.u32 %s4553_s13, 4  ;;  %s4554_s15 = smov [#allocation10]   ;;  %s196_s14 = int_to_ptr.vmem [resolvable:$true] %s195_s14 }
  0x13   : > { %p4661_p12 = pnand %p5414_p9, %p4166_p11  ;;  %s224_s16 = sshll.u32 %s4554_s15, 4  ;;  %s225_s16 = int_to_ptr.vmem [resolvable:$true] %s224_s16 }
  0x14   : > { %s4415_s17 = scalar_lea.vmem %s209_s11, 6144  ;;  %p4423_p3 = scmp.lt.s32.totalorder %s209_s11, %s209_s11 }
  0x15   : > { %p4406_p13 = pneg %p4661_p12  ;;  %p4416_p0 = scmp.ne.s32.totalorder %s209_s11, %s4415_s17 }
  0x16   : > { %p4424_p4 = scmp.lt.s32.totalorder %s4415_s17, %s4415_s17 }
  0x17   : > { %p4418_p1 = pnand %p4416_p0, %p4406_p13 }
  0x18   : > { %p4425_p7 = por %p4424_p4, %p4423_p3 }
  0x19   : > { %p4419_p2 = pneg %p4418_p1 }
  0x1b   : > { %p4426_p8 = pnand %p4425_p7, %p4419_p2 }
  0x1d   : > { %4429 = shalt.err (!%p4426_p8)
}
  0x1e   : > { %s4555_s18 = smov 64   ;;  %s4556_s19 = smov 4  }
  0x1f   : > { %4172 = dma.hbm_to_vmem [thread:$0]  (!%p4661_p12), %s5409_s2, 6144, %s209_s11, [#allocation9], %s4555_s18, %s4555_s18, %s4556_s19  }
  0x20   : > { %s4441_s28 = scalar_lea.vmem %s196_s14, 1024  ;;  %p4449_p9 = scmp.lt.s32.totalorder %s196_s14, %s196_s14 }
  0x21   : > { %p4442_p11 = scmp.ne.s32.totalorder %s196_s14, %s4441_s28  ;;  %p4450_p6 = scmp.lt.s32.totalorder %s4441_s28, %s4441_s28 }
  0x23   : > { %p4444_p0 = pnand %p4442_p11, %p4406_p13  ;;  %p4451_p3 = por %p4450_p6, %p4449_p9 }
  0x25   : > { %p4445_p1 = pneg %p4444_p0 }
  0x27   : > { %p4452_p2 = pnand %p4451_p3, %p4445_p1 }
  0x29   : > { %4455 = shalt.err (!%p4452_p2)
}
  0x2a   : > { %4169 = dma.hbm_to_vmem [thread:$0]  (!%p4661_p12), %s5408_s1, 1024, %s196_s14, [#allocation6], %s4555_s18, %s4555_s18, %s4556_s19  }
  0x2b   : > { %s4467_s11 = scalar_lea.vmem %s225_s16, 1024  ;;  %p4475_p11 = scmp.lt.s32.totalorder %s225_s16, %s225_s16 }
  0x2c   : > { %p4468_p4 = scmp.ne.s32.totalorder %s225_s16, %s4467_s11  ;;  %p4476_p0 = scmp.lt.s32.totalorder %s4467_s11, %s4467_s11 }
  0x2e   : > { %p4470_p7 = pnand %p4468_p4, %p4406_p13  ;;  %p4477_p5 = por %p4476_p0, %p4475_p11 }
  0x30   : > { %p4471_p8 = pneg %p4470_p7 }
  0x32   : > { %p4478_p6 = pnand %p4477_p5, %p4471_p8 }
  0x34   : > { %4481 = shalt.err (!%p4478_p6)
}
  0x35   : > { %4175 = dma.hbm_to_vmem [thread:$0]  (!%p4661_p12), %s5411_s4, 1024, %s225_s16, [#allocation9], %s4555_s18, %s4555_s18, %s4556_s19  }
  0x36   : > { %250 = sbr.rel (%p4653_p10) target bundleno = 1204 (0x4b4), region = 44  ;;  %p5422_p9 = scmp.eq.s32.totalorder (!%p4653_p10), %s4625_s25, 0 }
  0x3b   : > { %4525 = dma.done.wait (%p5422_p9), [#allocation6], 1024   ;;  %p5423_p13 = pmov %p5422_p9 }
  0x3c   : > { %p5424_p1 = pmov %p5422_p9 }
  0x3d   : > { %4527 = vsyncadd (%p5423_p13), [#allocation6], 4294966272 }
  0x3e   : > { %4529 = dma.done.wait (%p5424_p1), [#allocation9], 7168   ;;  %p5425_p5 = pmov %p5424_p1 }
  0x3f   : > { %p287_p3 = scmp.lt.s32.totalorder %s4625_s25, 1  ;;  %v4557_v0 = vmov 1   ;;  %v4558_v1 = vmov 0   ;;  %v5416_v2 = vmov 0.0   ;;  %vm4560_vm0 = vmmov 0   ;;  %v4712_v4 = vld [vmem:[#allocation5 + $0x38] sm:$0xff]  }
  0x40   : > { %4531 = vsyncadd (%p5425_p5), [#allocation9], 4294960128  ;;  %4237 = vset.pattern.permute.xlu1 %v4557_v0  ;;  %4235 = vset.pattern.permute.xlu0 %v4558_v1  ;;  %292 = vst [vmem:[#allocation2] sm:$0xf] %v4558_v1  ;;  %v4716_v5 = vld [vmem:[#allocation5 + $0x30] sm:$0xff]   ;;  %v4561_v6 = vmov 4   ;;  %v317_v18 = vlaneseq }
  0x41   : > { %294 = vst [vmem:[#allocation2 + $0x24] sm:$0xf] %v4558_v1  ;;  %296 = vst [vmem:[#allocation2 + $0x28] sm:$0xf] %v4558_v1  ;;  %s288_s9 = scalar_select %p287_p3, %s4625_s25, 1  ;;  %3972 = vmatprep.subr.bf16.mxu0 %v5416_v2  ;;  %3992 = vmatprep.subr.bf16.mxu1 %v5416_v2  ;;  %v4562_v7 = vmov 2  }
  0x42   : > { %298 = vst [vmem:[#allocation2 + $0x2c] sm:$0xf] %v4558_v1  ;;  %300 = vst [vmem:[#allocation2 + $0x30] sm:$0xf] %v4558_v1  ;;  %3988 = vmatprep.mubr.msk.bf16.mxu0 %vm4560_vm0, %v5416_v2  ;;  %4008 = vmatprep.mubr.msk.bf16.mxu1 %vm4560_vm0, %v5416_v2  ;;  %v4724_v8 = vld [vmem:[#allocation5 + $0x28] sm:$0xff]   ;;  %v4563_v9 = vmov 3  }
  0x43   : > { %s3172_s12 = sshll.u32 %s288_s9, 3  ;;  %3973 = vmatpush3.bf16.msra.mxu0 %v4712_v4  ;;  %3993 = vmatpush3.bf16.msra.mxu1 %v4712_v4  ;;  %v4564_v10 = vmov 5   ;;  %v4726_v11 = vld [vmem:[#allocation5 + $0x20] sm:$0xff]   ;;  %v4732_v12 = vld [vmem:[#allocation5 + $0x18] sm:$0xff]   ;;  %v4738_v13 = vld [vmem:[#allocation5 + $0x10] sm:$0xff]   ;;  %v4565_v16 = vmov 6  }
  0x44   : > { %s290_s17 = scalar_lea.vmem %s5407_s0, %s3172_s12  ;;  %3974 = vmatprep.subr.bf16.mxu0 %v5416_v2  ;;  %3994 = vmatprep.subr.bf16.mxu1 %v5416_v2  ;;  %v4744_v14 = vld [vmem:[#allocation5 + $0x8] sm:$0xff]   ;;  %v4750_v15 = vld [vmem:[#allocation5] sm:$0xff]   ;;  %v4566_v17 = vmov 7   ;;  %v4760_v19 = vand.u32 127, %v317_v18  ;;  %v4567_v22 = vmov 1.0|1.0  }
  0x45   : > { %v418_v3 = vld [vmem:[%s290_s17] sm:$0xff]  ;;  %v4878_v29 = vld [vmem:[#allocation8 + $0x78] sm:$0xff]   ;;  %v4914_v40 = vld [vmem:[#allocation8 + $0x60] sm:$0xff]   ;;  %s284_s20 = sand.u32 1, %s4542_s22   ;;  %s3360_s10 = sshll.u32 %s4625_s25, 7 }
  0x46   : > { %420 = vperm.xlu1 %4237, %v418_v3   ;;  %321 = vperm.xlu0 %4235, %v418_v3   ;;  %v4882_v30 = vld [vmem:[#allocation8 + $0xf8] sm:$0xff]   ;;  %v4889_v32 = vld [vmem:[#allocation8 + $0x70] sm:$0xff]   ;;  %v4902_v36 = vld [vmem:[#allocation8 + $0x68] sm:$0xff]   ;;  %s3171_s26 = sshll.u32 %s284_s20, 3  ;;  %s5366_s12 = scalar_lea.hbm %s5413_s6, %s3360_s10 }
  0x47   : > { %3975 = vmatpush3.bf16.msra.mxu0 %v4716_v5  ;;  %3995 = vmatpush3.bf16.msra.mxu1 %v4716_v5  ;;  %v4885_v31 = vld [vmem:[#allocation8 + $0x38] sm:$0xff]   ;;  %v4894_v34 = vld [vmem:[#allocation8 + $0xf0] sm:$0xff]   ;;  %v4908_v38 = vld [vmem:[#allocation8 + $0xe8] sm:$0xff]   ;;  %s286_s11 = scalar_lea.vmem [#allocation11], %s3171_s26  ;;  %s3058_s14 = scalar_lea.sflag [#allocation7], %s284_s20 }
  0x48   : > { %3976 = vmatprep.subr.bf16.mxu0 %v5416_v2  ;;  %3996 = vmatprep.subr.bf16.mxu1 %v5416_v2  ;;  %v4891_v33 = vld [vmem:[#allocation8 + $0xb8] sm:$0xff]   ;;  %v4899_v35 = vld [vmem:[#allocation8 + $0x30] sm:$0xff]   ;;  %v4911_v39 = vld [vmem:[#allocation8 + $0x28] sm:$0xff]   ;;  %s3071_s13 = sshll.u32 %s286_s11, 4  ;;  %p5427_p12 = scmp.ne.s32.totalorder %s5418_s7, 0  ;;  %s5368_s13 = int_to_ptr.vmem [resolvable:$true] %s3071_s13 }
  0x49   : > { %v4905_v37 = vld [vmem:[#allocation8 + $0xb0] sm:$0xff]   ;;  %v4917_v41 = vld [vmem:[#allocation8 + $0xa8] sm:$0xff]   ;;  %v4920_v42 = vld [vmem:[#allocation8 + $0xe0] sm:$0xff]   ;;  %s4482_s16 = scalar_lea.vmem %s5368_s13, 128  ;;  %s4568_s25 = smov [#allocation11]  }
  0x4a   : > { %4238 = vset.pattern.permute.xlu1 %v4561_v6  ;;  %4236 = vset.pattern.permute.xlu0 %v4562_v7  ;;  %v4923_v43 = vld [vmem:[#allocation8 + $0x20] sm:$0xff]   ;;  %v4926_v44 = vld [vmem:[#allocation8 + $0x58] sm:$0xff]   ;;  %v4938_v48 = vld [vmem:[#allocation8 + $0x50] sm:$0xff]   ;;  %p4483_p10 = scmp.ne.s32.totalorder %s5368_s13, %s4482_s16  ;;  %s4486_s17 = sshll.u32 %s4568_s25, 4  ;;  %s4487_s17 = int_to_ptr.vmem [resolvable:$false] %s4486_s17 }
  0x4b   : > { %573 = vperm.xlu1 %4238, %v418_v3   ;;  %471 = vperm.xlu0 %4236, %v418_v3   ;;  %v4929_v45 = vld [vmem:[#allocation8 + $0xa0] sm:$0xff]   ;;  %v4932_v46 = vld [vmem:[#allocation8 + $0xd8] sm:$0xff]   ;;  %v4944_v50 = vld [vmem:[#allocation8 + $0xd0] sm:$0xff]   ;;  %s4488_s18 = scalar_lea.vmem %s4487_s17, 256  ;;  %p4489_p7 = scmp.lt.s32.totalorder %s5368_s13, %s4487_s17 }
  0x4c   : > { %3977 = vmatpush3.bf16.msra.mxu0 %v4724_v8  ;;  %3997 = vmatpush3.bf16.msra.mxu1 %v4724_v8  ;;  %v4935_v47 = vld [vmem:[#allocation8 + $0x18] sm:$0xff]   ;;  %v4947_v51 = vld [vmem:[#allocation8 + $0x10] sm:$0xff]   ;;  %v4950_v52 = vld [vmem:[#allocation8 + $0x48] sm:$0xff]   ;;  %p4484_p2 = pnand %p4483_p10, %p5427_p12  ;;  %p4490_p8 = scmp.lt.s32.totalorder %s4488_s18, %s4482_s16 }
  0x4d   : > { %3978 = vmatprep.subr.bf16.mxu0 %v5416_v2  ;;  %3998 = vmatprep.subr.bf16.mxu1 %v5416_v2  ;;  %v4941_v49 = vld [vmem:[#allocation8 + $0x98] sm:$0xff]   ;;  %v4953_v53 = vld [vmem:[#allocation8 + $0x90] sm:$0xff]   ;;  %v4956_v54 = vld [vmem:[#allocation8 + $0xc8] sm:$0xff]  }
  0x4e   : > { %v4959_v55 = vld [vmem:[#allocation8 + $0x8] sm:$0xff]   ;;  %v4962_v56 = vld [vmem:[#allocation8 + $0x40] sm:$0xff]   ;;  %v4978_v61 = vld [vmem:[#allocation8 + $0x178] sm:$0xff]   ;;  %p4485_p4 = pneg %p4484_p2  ;;  %p4491_p11 = por %p4490_p8, %p4489_p7 }
  0x4f   : > { %4239 = vset.pattern.permute.xlu1 %v4563_v9  ;;  %4240 = vset.pattern.permute.xlu0 %v4564_v10  ;;  %v4965_v57 = vld [vmem:[#allocation8 + $0x88] sm:$0xff]   ;;  %v4968_v58 = vld [vmem:[#allocation8 + $0xc0] sm:$0xff]  }
  0x50   : > { %522 = vperm.xlu1 %4239, %v418_v3   ;;  %624 = vperm.xlu0 %4240, %v418_v3   ;;  %v4971_v59 = vld [vmem:[#allocation8] sm:$0xff]   ;;  %v775_v9 = vld [vmem:[#allocation2] sm:$0xf]  ;;  %p4492_p0 = pnand %p4491_p11, %p4485_p4 }
  0x51   : > { %3979 = vmatpush3.bf16.msra.mxu0 %v4726_v11  ;;  %3999 = vmatpush3.bf16.msra.mxu1 %v4726_v11  ;;  %v4975_v60 = vld [vmem:[#allocation8 + $0x80] sm:$0xff]  }
  0x52   : > { %3980 = vmatprep.subr.bf16.mxu0 %v5416_v2  ;;  %4000 = vmatprep.subr.bf16.mxu1 %v5416_v2 }
  0x54   : > { %4241 = vset.pattern.permute.xlu1 %v4565_v16  ;;  %4243 = vset.pattern.permute.xlu0 %v4566_v17 }
  0x55   : > { %3981 = vmatpush3.bf16.msra.mxu0 %v4732_v12  ;;  %4001 = vmatpush3.bf16.msra.mxu1 %v4732_v12 }
  0x56   : > { %3982 = vmatprep.subr.bf16.mxu0 %v5416_v2  ;;  %4002 = vmatprep.subr.bf16.mxu1 %v5416_v2 }
  0x57   : > { %675 = vperm.xlu1 %4241, %v418_v3  }
  0x59   : > { %3983 = vmatpush3.bf16.msra.mxu0 %v4738_v13  ;;  %4003 = vmatpush3.bf16.msra.mxu1 %v4738_v13 }
  0x5a   : > { %3984 = vmatprep.subr.bf16.mxu0 %v5416_v2  ;;  %4004 = vmatprep.subr.bf16.mxu1 %v5416_v2 }
  0x5b   : > { %4242 = vset.pattern.permute.xlu1 %v4566_v17 }
  0x5c   : > { %726 = vperm.xlu1 %4242, %v418_v3  }
  0x5d   : > { %3985 = vmatpush3.bf16.msra.mxu0 %v4744_v14  ;;  %4005 = vmatpush3.bf16.msra.mxu1 %v4744_v14 }
  0x5e   : > { %3986 = vmatprep.subr.bf16.mxu0 %v5416_v2  ;;  %4006 = vmatprep.subr.bf16.mxu1 %v5416_v2 }
  0x61   : > { %3987 = vmatpush3.bf16.msra.mxu0 %v4750_v15  ;;  %4007 = vmatpush3.bf16.msra.mxu1 %v4750_v15 }
  0x62   : > { %4012 = vmatprep.subr.bf16.mxu0 %v5416_v2  ;;  %4032 = vmatprep.subr.bf16.mxu1 %v5416_v2 }
  0xc1   : > { %v421_v20 = vpop.permute.xlu1 %420  ;;  %v322_v21 = vpop.permute.xlu0 %321 }
  0xc2   : > { %vm422_vm1 = vcmp.eq.s32.totalorder %v421_v20, %v4760_v19  ;;  %vm323_vm2 = vcmp.eq.s32.totalorder %v322_v21, %v4760_v19 }
  0xc3   : > { %vm3185_vm3 = vmpackc.low %vm422_vm1, %vm422_vm1 }
  0xc4   : > { %vm3182_vm4 = vmpackc.low %vm323_vm2, %vm323_vm2  ;;  %4009 = vmatmul.mubr.msk.bf16.vlgmr.msra.gmra.mxu1 %vm3185_vm3, %v4567_v22  ;;  %vm2929_vm2 = vcmp.lt.s32.totalorder %v4760_v19, 32 }
  0xc5   : > { %3989 = vmatmul.mubr.msk.bf16.vlgmr.msra.gmra.mxu0 %vm3182_vm4, %v4567_v22  ;;  %4033 = vmatpush3.bf16.msra.mxu1 %v4712_v4 }
  0xc6   : > { %4013 = vmatpush3.bf16.msra.mxu0 %v4712_v4  ;;  %4034 = vmatprep.subr.bf16.mxu1 %v5416_v2  ;;  %v574_v23 = vpop.permute.xlu1 %573  ;;  %v472_v25 = vpop.permute.xlu0 %471 }
  0xc7   : > { %4014 = vmatprep.subr.bf16.mxu0 %v5416_v2  ;;  %4028 = vmatprep.mubr.msk.bf16.mxu0 %vm4560_vm0, %v5416_v2  ;;  %vm473_vm6 = vcmp.eq.s32.totalorder %v472_v25, %v4760_v19  ;;  %vm575_vm10 = vcmp.eq.s32.totalorder %v574_v23, %v4760_v19 }
  0xc8   : > { %4048 = vmatprep.mubr.msk.bf16.mxu1 %vm4560_vm0, %v5416_v2  ;;  %vm3188_vm8 = vmpackc.low %vm473_vm6, %vm473_vm6 }
  0xc9   : > { %4035 = vmatpush3.bf16.msra.mxu1 %v4716_v5  ;;  %vm3194_vm12 = vmpackc.low %vm575_vm10, %vm575_vm10 }
  0xca   : > { %4015 = vmatpush3.bf16.msra.mxu0 %v4716_v5  ;;  %4036 = vmatprep.subr.bf16.mxu1 %v5416_v2 }
  0xcb   : > { %4016 = vmatprep.subr.bf16.mxu0 %v5416_v2  ;;  %v523_v24 = vpop.permute.xlu1 %522  ;;  %v625_v26 = vpop.permute.xlu0 %624 }
  0xcc   : > { %vm524_vm5 = vcmp.eq.s32.totalorder %v523_v24, %v4760_v19  ;;  %vm626_vm9 = vcmp.eq.s32.totalorder %v625_v26, %v4760_v19  ;;  %v5006_v24 = vld [vmem:[#allocation8 + $0x138] sm:$0xff]   ;;  %v5012_v26 = vld [vmem:[#allocation8 + $0x170] sm:$0xff]  }
  0xcd   : > { %4037 = vmatpush3.bf16.msra.mxu1 %v4724_v8  ;;  %vm3191_vm7 = vmpackc.low %vm524_vm5, %vm524_vm5 }
  0xce   : > { %4017 = vmatpush3.bf16.msra.mxu0 %v4724_v8  ;;  %4038 = vmatprep.subr.bf16.mxu1 %v5416_v2  ;;  %vm3197_vm11 = vmpackc.low %vm626_vm9, %vm626_vm9 }
  0xcf   : > { %4018 = vmatprep.subr.bf16.mxu0 %v5416_v2 }
  0xd1   : > { %4039 = vmatpush3.bf16.msra.mxu1 %v4726_v11 }
  0xd2   : > { %4019 = vmatpush3.bf16.msra.mxu0 %v4726_v11  ;;  %4040 = vmatprep.subr.bf16.mxu1 %v5416_v2  ;;  %v676_v27 = vpop.permute.xlu1 %675 }
  0xd3   : > { %4020 = vmatprep.subr.bf16.mxu0 %v5416_v2  ;;  %vm677_vm14 = vcmp.eq.s32.totalorder %v676_v27, %v4760_v19  ;;  %v5019_v27 = vld [vmem:[#allocation8 + $0x130] sm:$0xff]  }
  0xd4   : > { %vm3200_vm1 = vmpackc.low %vm677_vm14, %vm677_vm14 }
  0xd5   : > { %4041 = vmatpush3.bf16.msra.mxu1 %v4732_v12 }
  0xd6   : > { %4021 = vmatpush3.bf16.msra.mxu0 %v4732_v12  ;;  %4042 = vmatprep.subr.bf16.mxu1 %v5416_v2 }
  0xd7   : > { %4022 = vmatprep.subr.bf16.mxu0 %v5416_v2  ;;  %v727_v28 = vpop.permute.xlu1 %726 }
  0xd8   : > { %vm728_vm13 = vcmp.eq.s32.totalorder %v727_v28, %v4760_v19  ;;  %v5023_v28 = vld [vmem:[#allocation8 + $0x168] sm:$0xff]  }
  0xd9   : > { %4043 = vmatpush3.bf16.msra.mxu1 %v4738_v13  ;;  %vm3203_vm15 = vmpackc.low %vm728_vm13, %vm728_vm13 }
  0xda   : > { %4023 = vmatpush3.bf16.msra.mxu0 %v4738_v13  ;;  %4044 = vmatprep.subr.bf16.mxu1 %v5416_v2 }
  0xdb   : > { %4024 = vmatprep.subr.bf16.mxu0 %v5416_v2 }
  0xdd   : > { %4045 = vmatpush3.bf16.msra.mxu1 %v4744_v14 }
  0xde   : > { %4025 = vmatpush3.bf16.msra.mxu0 %v4744_v14  ;;  %4046 = vmatprep.subr.bf16.mxu1 %v5416_v2 }
  0xdf   : > { %4026 = vmatprep.subr.bf16.mxu0 %v5416_v2 }
  0xe1   : > { %4047 = vmatpush3.bf16.msra.mxu1 %v4750_v15 }
  0xe2   : > { %4027 = vmatpush3.bf16.msra.mxu0 %v4750_v15  ;;  %4072 = vmatprep.subr.bf16.mxu1 %v5416_v2 }
  0xe3   : > { %4052 = vmatprep.subr.bf16.mxu0 %v5416_v2 }
  0xe4   : > { %4049 = vmatmul.mubr.msk.bf16.vlgmr.msra.gmra.mxu1 %vm3191_vm7, %v4567_v22 }
  0xe5   : > { %4029 = vmatmul.mubr.msk.bf16.vlgmr.msra.gmra.mxu0 %vm3188_vm8, %v4567_v22  ;;  %4073 = vmatpush3.bf16.msra.mxu1 %v4712_v4 }
  0xe6   : > { %4053 = vmatpush3.bf16.msra.mxu0 %v4712_v4  ;;  %4074 = vmatprep.subr.bf16.mxu1 %v5416_v2 }
  0xe7   : > { %4054 = vmatprep.subr.bf16.mxu0 %v5416_v2  ;;  %4068 = vmatprep.mubr.msk.bf16.mxu0 %vm4560_vm0, %v5416_v2 }
  0xe8   : > { %4088 = vmatprep.mubr.msk.bf16.mxu1 %vm4560_vm0, %v5416_v2 }
  0xe9   : > { %4075 = vmatpush3.bf16.msra.mxu1 %v4716_v5 }
  0xea   : > { %4055 = vmatpush3.bf16.msra.mxu0 %v4716_v5  ;;  %4076 = vmatprep.subr.bf16.mxu1 %v5416_v2 }
  0xeb   : > { %4056 = vmatprep.subr.bf16.mxu0 %v5416_v2 }
  0xed   : > { %4077 = vmatpush3.bf16.msra.mxu1 %v4724_v8 }
  0xee   : > { %4057 = vmatpush3.bf16.msra.mxu0 %v4724_v8  ;;  %4078 = vmatprep.subr.bf16.mxu1 %v5416_v2 }
  0xef   : > { %4058 = vmatprep.subr.bf16.mxu0 %v5416_v2 }
  0xf1   : > { %4079 = vmatpush3.bf16.msra.mxu1 %v4726_v11 }
  0xf2   : > { %4059 = vmatpush3.bf16.msra.mxu0 %v4726_v11  ;;  %4080 = vmatprep.subr.bf16.mxu1 %v5416_v2 }
  0xf3   : > { %4060 = vmatprep.subr.bf16.mxu0 %v5416_v2 }
  0xf5   : > { %4081 = vmatpush3.bf16.msra.mxu1 %v4732_v12 }
  0xf6   : > { %4061 = vmatpush3.bf16.msra.mxu0 %v4732_v12  ;;  %4082 = vmatprep.subr.bf16.mxu1 %v5416_v2 }
  0xf7   : > { %4062 = vmatprep.subr.bf16.mxu0 %v5416_v2 }
  0xf9   : > { %4083 = vmatpush3.bf16.msra.mxu1 %v4738_v13 }
  0xfa   : > { %4063 = vmatpush3.bf16.msra.mxu0 %v4738_v13  ;;  %4084 = vmatprep.subr.bf16.mxu1 %v5416_v2 }
  0xfb   : > { %4064 = vmatprep.subr.bf16.mxu0 %v5416_v2 }
  0xfd   : > { %4085 = vmatpush3.bf16.msra.mxu1 %v4744_v14 }
  0xfe   : > { %4065 = vmatpush3.bf16.msra.mxu0 %v4744_v14  ;;  %4086 = vmatprep.subr.bf16.mxu1 %v5416_v2 }
  0xff   : > { %4066 = vmatprep.subr.bf16.mxu0 %v5416_v2 }
 0x101   : > { %4087 = vmatpush3.bf16.msra.mxu1 %v4750_v15 }
 0x102   : > { %4067 = vmatpush3.bf16.msra.mxu0 %v4750_v15  ;;  %4112 = vmatprep.subr.bf16.mxu1 %v5416_v2 }
 0x103   : > { %4092 = vmatprep.subr.bf16.mxu0 %v5416_v2 }
 0x104   : > { %4089 = vmatmul.mubr.msk.bf16.vlgmr.msra.gmra.mxu1 %vm3197_vm11, %v4567_v22 }
 0x105   : > { %4069 = vmatmul.mubr.msk.bf16.vlgmr.msra.gmra.mxu0 %vm3194_vm12, %v4567_v22  ;;  %4113 = vmatpush3.bf16.msra.mxu1 %v4712_v4 }
 0x106   : > { %4093 = vmatpush3.bf16.msra.mxu0 %v4712_v4  ;;  %4114 = vmatprep.subr.bf16.mxu1 %v5416_v2 }
 0x107   : > { %4094 = vmatprep.subr.bf16.mxu0 %v5416_v2  ;;  %4108 = vmatprep.mubr.msk.bf16.mxu0 %vm4560_vm0, %v5416_v2 }
 0x108   : > { %4128 = vmatprep.mubr.msk.bf16.mxu1 %vm4560_vm0, %v5416_v2 }
 0x109   : > { %4115 = vmatpush3.bf16.msra.mxu1 %v4716_v5 }
 0x10a   : > { %4095 = vmatpush3.bf16.msra.mxu0 %v4716_v5  ;;  %4116 = vmatprep.subr.bf16.mxu1 %v5416_v2 }
 0x10b   : > { %4096 = vmatprep.subr.bf16.mxu0 %v5416_v2 }
 0x10d   : > { %4117 = vmatpush3.bf16.msra.mxu1 %v4724_v8 }
 0x10e   : > { %4097 = vmatpush3.bf16.msra.mxu0 %v4724_v8  ;;  %4118 = vmatprep.subr.bf16.mxu1 %v5416_v2 }
 0x10f   : > { %4098 = vmatprep.subr.bf16.mxu0 %v5416_v2 }
 0x111   : > { %4119 = vmatpush3.bf16.msra.mxu1 %v4726_v11 }
 0x112   : > { %4099 = vmatpush3.bf16.msra.mxu0 %v4726_v11  ;;  %4120 = vmatprep.subr.bf16.mxu1 %v5416_v2 }
 0x113   : > { %4100 = vmatprep.subr.bf16.mxu0 %v5416_v2 }
 0x115   : > { %4121 = vmatpush3.bf16.msra.mxu1 %v4732_v12 }
 0x116   : > { %4101 = vmatpush3.bf16.msra.mxu0 %v4732_v12  ;;  %4122 = vmatprep.subr.bf16.mxu1 %v5416_v2 }
 0x117   : > { %4102 = vmatprep.subr.bf16.mxu0 %v5416_v2 }
 0x119   : > { %4123 = vmatpush3.bf16.msra.mxu1 %v4738_v13 }
 0x11a   : > { %4103 = vmatpush3.bf16.msra.mxu0 %v4738_v13  ;;  %4124 = vmatprep.subr.bf16.mxu1 %v5416_v2 }
 0x11b   : > { %4104 = vmatprep.subr.bf16.mxu0 %v5416_v2 }
 0x11d   : > { %4125 = vmatpush3.bf16.msra.mxu1 %v4744_v14 }
 0x11e   : > { %4105 = vmatpush3.bf16.msra.mxu0 %v4744_v14  ;;  %4126 = vmatprep.subr.bf16.mxu1 %v5416_v2 }
 0x11f   : > { %4106 = vmatprep.subr.bf16.mxu0 %v5416_v2 }
 0x121   : > { %4127 = vmatpush3.bf16.msra.mxu1 %v4750_v15 }
 0x122   : > { %4107 = vmatpush3.bf16.msra.mxu0 %v4750_v15  ;;  %3457 = vmatprep.subr.bf16.mxu1 %v4878_v29 }
 0x123   : > { %3435 = vmatprep.subr.bf16.mxu0 %v4882_v30 }
 0x124   : > { %4129 = vmatmul.mubr.msk.bf16.vlgmr.msra.gmra.mxu1 %vm3203_vm15, %v4567_v22 }
 0x125   : > { %4109 = vmatmul.mubr.msk.bf16.vlgmr.msra.gmra.mxu0 %vm3200_vm1, %v4567_v22  ;;  %3458 = vmatpush3.bf16.msra.mxu1 %v4885_v31 }
 0x126   : > { %3459 = vmatprep.subr.bf16.mxu1 %v4889_v32  ;;  %3436 = vmatpush3.bf16.msra.mxu0 %v4891_v33 }
 0x127   : > { %3437 = vmatprep.subr.bf16.mxu0 %v4894_v34 }
 0x129   : > { %3460 = vmatpush3.bf16.msra.mxu1 %v4899_v35 }
 0x12a   : > { %3461 = vmatprep.subr.bf16.mxu1 %v4902_v36  ;;  %3438 = vmatpush3.bf16.msra.mxu0 %v4905_v37 }
 0x12b   : > { %3439 = vmatprep.subr.bf16.mxu0 %v4908_v38 }
 0x12d   : > { %3462 = vmatpush3.bf16.msra.mxu1 %v4911_v39 }
 0x12e   : > { %3463 = vmatprep.subr.bf16.mxu1 %v4914_v40  ;;  %3440 = vmatpush3.bf16.msra.mxu0 %v4917_v41 }
 0x12f   : > { %3441 = vmatprep.subr.bf16.mxu0 %v4920_v42 }
 0x131   : > { %3464 = vmatpush3.bf16.msra.mxu1 %v4923_v43 }
 0x132   : > { %3465 = vmatprep.subr.bf16.mxu1 %v4926_v44  ;;  %3442 = vmatpush3.bf16.msra.mxu0 %v4929_v45 }
 0x133   : > { %3443 = vmatprep.subr.bf16.mxu0 %v4932_v46 }
 0x135   : > { %3466 = vmatpush3.bf16.msra.mxu1 %v4935_v47 }
 0x136   : > { %3467 = vmatprep.subr.bf16.mxu1 %v4938_v48  ;;  %3444 = vmatpush3.bf16.msra.mxu0 %v4941_v49 }
 0x137   : > { %3445 = vmatprep.subr.bf16.mxu0 %v4944_v50 }
 0x139   : > { %3468 = vmatpush3.bf16.msra.mxu1 %v4947_v51 }
 0x13a   : > { %3469 = vmatprep.subr.bf16.mxu1 %v4950_v52  ;;  %3446 = vmatpush3.bf16.msra.mxu0 %v4953_v53 }
 0x13b   : > { %3447 = vmatprep.subr.bf16.mxu0 %v4956_v54 }
 0x13d   : > { %3470 = vmatpush3.bf16.msra.mxu1 %v4959_v55 }
 0x13e   : > { %3471 = vmatprep.subr.bf16.mxu1 %v4962_v56  ;;  %3448 = vmatpush3.bf16.msra.mxu0 %v4965_v57 }
 0x13f   : > { %3449 = vmatprep.subr.bf16.mxu0 %v4968_v58 }
 0x141   : > { %3472 = vmatpush3.bf16.msra.mxu1 %v4971_v59 }
 0x142   : > { %3501 = vmatprep.subr.bf16.mxu1 %v4882_v30  ;;  %3450 = vmatpush3.bf16.msra.mxu0 %v4975_v60 }
 0x143   : > { %3479 = vmatprep.subr.bf16.mxu0 %v4978_v61 }
 0x184   : > { %v460_v62 = vpop.f32.mrf.mxu1 }
 0x185   : > { %v409_v63 = vpop.f32.mrf.mxu0  ;;  %v466_v0 = vpack.c.bf16 %v460_v62, %v460_v62  ;;  %v5027_v62 = vld [vmem:[#allocation8 + $0x128] sm:$0xff]  }
 0x186   : > { %v415_v1 = vpack.c.bf16 %v409_v63, %v409_v63  ;;  %v4010_v3 = vpop.f32.mrf.mxu1  ;;  %v5031_v63 = vld [vmem:[#allocation8 + $0x160] sm:$0xff]  }
 0x187   : > { %v3990_v4 = vpop.f32.mrf.mxu0  ;;  %468 = vst [vmem:[#allocation2 + $0x8] sm:$0xf] %v466_v0  ;;  %v5035_v0 = vld [vmem:[#allocation8 + $0x120] sm:$0xff]   ;;  %v5043_v3 = vld [vmem:[#allocation8 + $0x118] sm:$0xff]  }
 0x188   : > { %417 = vst [vmem:[#allocation2 + $0x4] sm:$0xf] %v415_v1  ;;  %v463_v5 = vpop.f32.mrf.mxu1  ;;  %v5039_v1 = vld [vmem:[#allocation8 + $0x158] sm:$0xff]   ;;  %v5047_v4 = vld [vmem:[#allocation8 + $0x150] sm:$0xff]  }
 0x189   : > { %v412_v6 = vpop.f32.mrf.mxu0  ;;  %v5051_v5 = vld [vmem:[#allocation8 + $0x110] sm:$0xff]  }
 0x18a   : > { %v4011_v7 = vpop.f32.mrf.mxu1  ;;  %v5055_v6 = vld [vmem:[#allocation8 + $0x148] sm:$0xff]  }
 0x18b   : > { %v3991_v8 = vpop.f32.mrf.mxu0 }
 0x18e   : > { %v5004_v23 = vld [vmem:[#allocation2 + $0x8] sm:$0xf] }
 0x18f   : > { %v4984_v10 = vld [vmem:[#allocation2 + $0x4] sm:$0xf] }
 0x190   : > { %1108 = vmatprep.mubr.bf16.mxu1 %v4984_v10 }
 0x191   : > { %1109 = vmatmul.mubr.bf16.vlgmr.msra.gmra.mxu1 %v775_v9 }
 0x192   : > { %3502 = vmatpush3.bf16.msra.mxu1 %v4891_v33 }
 0x193   : > { %3503 = vmatprep.subr.bf16.mxu1 %v4894_v34 }
 0x196   : > { %3504 = vmatpush3.bf16.msra.mxu1 %v4905_v37 }
 0x197   : > { %3505 = vmatprep.subr.bf16.mxu1 %v4908_v38 }
 0x19a   : > { %3506 = vmatpush3.bf16.msra.mxu1 %v4917_v41 }
 0x19b   : > { %3507 = vmatprep.subr.bf16.mxu1 %v4920_v42 }
 0x19e   : > { %3508 = vmatpush3.bf16.msra.mxu1 %v4929_v45 }
 0x19f   : > { %3509 = vmatprep.subr.bf16.mxu1 %v4932_v46 }
 0x1a2   : > { %3510 = vmatpush3.bf16.msra.mxu1 %v4941_v49 }
 0x1a3   : > { %3511 = vmatprep.subr.bf16.mxu1 %v4944_v50 }
 0x1a4   : > { %v562_v11 = vpop.f32.mrf.mxu1 }
 0x1a5   : > { %v511_v12 = vpop.f32.mrf.mxu0  ;;  %v568_v13 = vpack.c.bf16 %v562_v11, %v562_v11 }
 0x1a6   : > { %v517_v14 = vpack.c.bf16 %v511_v12, %v511_v12  ;;  %3512 = vmatpush3.bf16.msra.mxu1 %v4953_v53  ;;  %v4050_v15 = vpop.f32.mrf.mxu1  ;;  %v5059_v12 = vld [vmem:[#allocation8 + $0x108] sm:$0xff]  }
 0x1a7   : > { %570 = vst [vmem:[#allocation2 + $0x10] sm:$0xf] %v568_v13  ;;  %v4030_v16 = vpop.f32.mrf.mxu0  ;;  %3513 = vmatprep.subr.bf16.mxu1 %v4956_v54  ;;  %v5063_v15 = vld [vmem:[#allocation8 + $0x140] sm:$0xff]  }
 0x1a8   : > { %519 = vst [vmem:[#allocation2 + $0xc] sm:$0xf] %v517_v14  ;;  %v565_v17 = vpop.f32.mrf.mxu1 }
 0x1a9   : > { %v514_v18 = vpop.f32.mrf.mxu0 }
 0x1aa   : > { %3514 = vmatpush3.bf16.msra.mxu1 %v4965_v57  ;;  %v4051_v20 = vpop.f32.mrf.mxu1  ;;  %v5067_v18 = vld [vmem:[#allocation8 + $0x100] sm:$0xff]  }
 0x1ab   : > { %v4031_v21 = vpop.f32.mrf.mxu0  ;;  %3515 = vmatprep.subr.bf16.mxu1 %v4968_v58 }
 0x1ae   : > { %3516 = vmatpush3.bf16.msra.mxu1 %v4975_v60  ;;  %v5002_v22 = vld [vmem:[#allocation2 + $0x10] sm:$0xf] }
 0x1af   : > { %v5008_v25 = vld [vmem:[#allocation2 + $0xc] sm:$0xf]  ;;  %1320 = vmatprep.mubr.bf16.mxu1 %v5002_v22  ;;  %3545 = vmatprep.subr.bf16.mxu1 %v4978_v61 }
 0x1b0   : > { %972 = vmatprep.mubr.bf16.mxu0 %v5008_v25 }
 0x1b1   : > { %973 = vmatmul.mubr.bf16.vlgmr.msra.gmra.mxu0 %v5004_v23  ;;  %1321 = vmatmul.mubr.bf16.vlgmr.msra.gmra.mxu1 %v5008_v25 }
 0x1b2   : > { %3480 = vmatpush3.bf16.msra.mxu0 %v5006_v24  ;;  %3546 = vmatpush3.bf16.msra.mxu1 %v5006_v24 }
 0x1b3   : > { %3481 = vmatprep.subr.bf16.mxu0 %v5012_v26  ;;  %3547 = vmatprep.subr.bf16.mxu1 %v5012_v26 }
 0x1b6   : > { %3482 = vmatpush3.bf16.msra.mxu0 %v5019_v27  ;;  %3548 = vmatpush3.bf16.msra.mxu1 %v5019_v27 }
 0x1b7   : > { %3483 = vmatprep.subr.bf16.mxu0 %v5023_v28  ;;  %3549 = vmatprep.subr.bf16.mxu1 %v5023_v28 }
 0x1ba   : > { %3484 = vmatpush3.bf16.msra.mxu0 %v5027_v62  ;;  %3550 = vmatpush3.bf16.msra.mxu1 %v5027_v62 }
 0x1bb   : > { %3485 = vmatprep.subr.bf16.mxu0 %v5031_v63  ;;  %3551 = vmatprep.subr.bf16.mxu1 %v5031_v63 }
 0x1be   : > { %3486 = vmatpush3.bf16.msra.mxu0 %v5035_v0  ;;  %3552 = vmatpush3.bf16.msra.mxu1 %v5035_v0 }
 0x1bf   : > { %3487 = vmatprep.subr.bf16.mxu0 %v5039_v1  ;;  %3553 = vmatprep.subr.bf16.mxu1 %v5039_v1 }
 0x1c2   : > { %3488 = vmatpush3.bf16.msra.mxu0 %v5043_v3  ;;  %3554 = vmatpush3.bf16.msra.mxu1 %v5043_v3 }
 0x1c3   : > { %3489 = vmatprep.subr.bf16.mxu0 %v5047_v4  ;;  %3555 = vmatprep.subr.bf16.mxu1 %v5047_v4 }
 0x1c4   : > { %v664_v7 = vpop.f32.mrf.mxu1 }
 0x1c5   : > { %v613_v8 = vpop.f32.mrf.mxu0  ;;  %v670_v9 = vpack.c.bf16 %v664_v7, %v664_v7 }
 0x1c6   : > { %v619_v11 = vpack.c.bf16 %v613_v8, %v613_v8  ;;  %3490 = vmatpush3.bf16.msra.mxu0 %v5051_v5  ;;  %3556 = vmatpush3.bf16.msra.mxu1 %v5051_v5  ;;  %v4090_v13 = vpop.f32.mrf.mxu1 }
 0x1c7   : > { %672 = vst [vmem:[#allocation2 + $0x18] sm:$0xf] %v670_v9  ;;  %v4070_v14 = vpop.f32.mrf.mxu0  ;;  %3491 = vmatprep.subr.bf16.mxu0 %v5055_v6  ;;  %3557 = vmatprep.subr.bf16.mxu1 %v5055_v6 }
 0x1c8   : > { %621 = vst [vmem:[#allocation2 + $0x14] sm:$0xf] %v619_v11  ;;  %v667_v16 = vpop.f32.mrf.mxu1 }
 0x1c9   : > { %v616_v17 = vpop.f32.mrf.mxu0 }
 0x1ca   : > { %3492 = vmatpush3.bf16.msra.mxu0 %v5059_v12  ;;  %3558 = vmatpush3.bf16.msra.mxu1 %v5059_v12  ;;  %v4091_v20 = vpop.f32.mrf.mxu1 }
 0x1cb   : > { %v4071_v21 = vpop.f32.mrf.mxu0  ;;  %3493 = vmatprep.subr.bf16.mxu0 %v5063_v15  ;;  %3559 = vmatprep.subr.bf16.mxu1 %v5063_v15 }
 0x1ce   : > { %3494 = vmatpush3.bf16.msra.mxu0 %v5067_v18  ;;  %3560 = vmatpush3.bf16.msra.mxu1 %v5067_v18  ;;  %v5073_v7 = vld [vmem:[#allocation2 + $0x18] sm:$0xf] }
 0x1cf   : > { %v5075_v8 = vld [vmem:[#allocation2 + $0x14] sm:$0xf]  ;;  %3523 = vmatprep.subr.bf16.mxu0 %v4878_v29  ;;  %1401 = vmatprep.mubr.bf16.mxu1 %v5073_v7 }
 0x1d0   : > { %1279 = vmatprep.mubr.bf16.mxu0 %v5075_v8  ;;  %3589 = vmatprep.subr.bf16.mxu1 %v4878_v29 }
 0x1d1   : > { %1280 = vmatmul.mubr.bf16.vlgmr.msra.gmra.mxu0 %v5002_v22  ;;  %1402 = vmatmul.mubr.bf16.vlgmr.msra.gmra.mxu1 %v5075_v8 }
 0x1d2   : > { %3524 = vmatpush3.bf16.msra.mxu0 %v4885_v31  ;;  %1360 = vmatprep.mubr.bf16.mxu0 %v5004_v23 }
 0x1d3   : > { %3590 = vmatpush3.bf16.msra.mxu1 %v4885_v31  ;;  %1483 = vmatprep.mubr.bf16.mxu1 %v5008_v25 }
 0x1d4   : > { %3525 = vmatprep.subr.bf16.mxu0 %v4889_v32  ;;  %3591 = vmatprep.subr.bf16.mxu1 %v4889_v32 }
 0x1d6   : > { %3526 = vmatpush3.bf16.msra.mxu0 %v4899_v35 }
 0x1d7   : > { %3592 = vmatpush3.bf16.msra.mxu1 %v4899_v35  ;;  %3527 = vmatprep.subr.bf16.mxu0 %v4902_v36 }
 0x1d8   : > { %3593 = vmatprep.subr.bf16.mxu1 %v4902_v36 }
 0x1da   : > { %3528 = vmatpush3.bf16.msra.mxu0 %v4911_v39 }
 0x1db   : > { %3594 = vmatpush3.bf16.msra.mxu1 %v4911_v39  ;;  %3529 = vmatprep.subr.bf16.mxu0 %v4914_v40 }
 0x1dc   : > { %3595 = vmatprep.subr.bf16.mxu1 %v4914_v40 }
 0x1de   : > { %3530 = vmatpush3.bf16.msra.mxu0 %v4923_v43 }
 0x1df   : > { %3596 = vmatpush3.bf16.msra.mxu1 %v4923_v43  ;;  %3531 = vmatprep.subr.bf16.mxu0 %v4926_v44 }
 0x1e0   : > { %3597 = vmatprep.subr.bf16.mxu1 %v4926_v44 }
 0x1e2   : > { %3532 = vmatpush3.bf16.msra.mxu0 %v4935_v47 }
 0x1e3   : > { %3598 = vmatpush3.bf16.msra.mxu1 %v4935_v47  ;;  %3533 = vmatprep.subr.bf16.mxu0 %v4938_v48 }
 0x1e4   : > { %3599 = vmatprep.subr.bf16.mxu1 %v4938_v48  ;;  %v766_v9 = vpop.f32.mrf.mxu1 }
 0x1e5   : > { %v715_v11 = vpop.f32.mrf.mxu0  ;;  %v772_v13 = vpack.c.bf16 %v766_v9, %v766_v9 }
 0x1e6   : > { %3534 = vmatpush3.bf16.msra.mxu0 %v4947_v51  ;;  %v721_v14 = vpack.c.bf16 %v715_v11, %v715_v11  ;;  %v4130_v16 = vpop.f32.mrf.mxu1 }
 0x1e7   : > { %3600 = vmatpush3.bf16.msra.mxu1 %v4947_v51  ;;  %3535 = vmatprep.subr.bf16.mxu0 %v4950_v52  ;;  %v4110_v17 = vpop.f32.mrf.mxu0  ;;  %774 = vst [vmem:[#allocation2 + $0x20] sm:$0xf] %v772_v13 }
 0x1e8   : > { %3601 = vmatprep.subr.bf16.mxu1 %v4950_v52  ;;  %723 = vst [vmem:[#allocation2 + $0x1c] sm:$0xf] %v721_v14  ;;  %v769_v20 = vpop.f32.mrf.mxu1  ;;  %v1939_v14 = vld [vmem:[#allocation2 + $0x24] sm:$0xf]  ;;  %v2452_v17 = vld [vmem:[#allocation2 + $0x28] sm:$0xf] }
 0x1e9   : > { %v718_v21 = vpop.f32.mrf.mxu0  ;;  %v4319_v20 = vld [vmem:[#allocation8 + $0xb0] sm:$0xff]  }
 0x1ea   : > { %3536 = vmatpush3.bf16.msra.mxu0 %v4959_v55  ;;  %v4131_v2 = vpop.f32.mrf.mxu1 }
 0x1eb   : > { %3602 = vmatpush3.bf16.msra.mxu1 %v4959_v55  ;;  %3537 = vmatprep.subr.bf16.mxu0 %v4962_v56  ;;  %v4111_v9 = vpop.f32.mrf.mxu0 }
 0x1ec   : > { %3603 = vmatprep.subr.bf16.mxu1 %v4962_v56 }
 0x1ee   : > { %3538 = vmatpush3.bf16.msra.mxu0 %v4971_v59 }
 0x1ef   : > { %3604 = vmatpush3.bf16.msra.mxu1 %v4971_v59  ;;  %3567 = vmatprep.subr.bf16.mxu0 %v4882_v30  ;;  %v5151_v2 = vld [vmem:[#allocation2 + $0x1c] sm:$0xf] }
 0x1f0   : > { %3633 = vmatprep.subr.bf16.mxu1 %v4882_v30 }
 0x1f1   : > { %1361 = vmatmul.mubr.bf16.vlgmr.msra.gmra.mxu0 %v4984_v10  ;;  %v5156_v10 = vld [vmem:[#allocation2 + $0x20] sm:$0xf] }
 0x1f2   : > { %3568 = vmatpush3.bf16.msra.mxu0 %v4891_v33  ;;  %1443 = vmatprep.mubr.bf16.mxu0 %v5075_v8 }
 0x1f3   : > { %1484 = vmatmul.mubr.bf16.vlgmr.msra.gmra.mxu1 %v5004_v23  ;;  %3569 = vmatprep.subr.bf16.mxu0 %v4894_v34 }
 0x1f4   : > { %3634 = vmatpush3.bf16.msra.mxu1 %v4891_v33  ;;  %1566 = vmatprep.mubr.bf16.mxu1 %v5073_v7 }
 0x1f5   : > { %3635 = vmatprep.subr.bf16.mxu1 %v4894_v34 }
 0x1f6   : > { %3570 = vmatpush3.bf16.msra.mxu0 %v4905_v37 }
 0x1f7   : > { %3571 = vmatprep.subr.bf16.mxu0 %v4908_v38 }
 0x1f8   : > { %3636 = vmatpush3.bf16.msra.mxu1 %v4905_v37 }
 0x1f9   : > { %3637 = vmatprep.subr.bf16.mxu1 %v4908_v38 }
 0x1fa   : > { %3572 = vmatpush3.bf16.msra.mxu0 %v4917_v41 }
 0x1fb   : > { %3573 = vmatprep.subr.bf16.mxu0 %v4920_v42 }
 0x1fc   : > { %3638 = vmatpush3.bf16.msra.mxu1 %v4917_v41 }
 0x1fd   : > { %3639 = vmatprep.subr.bf16.mxu1 %v4920_v42 }
 0x1fe   : > { %3574 = vmatpush3.bf16.msra.mxu0 %v4929_v45 }
 0x1ff   : > { %3575 = vmatprep.subr.bf16.mxu0 %v4932_v46 }
 0x200   : > { %3640 = vmatpush3.bf16.msra.mxu1 %v4929_v45 }
 0x201   : > { %3641 = vmatprep.subr.bf16.mxu1 %v4932_v46 }
 0x202   : > { %3576 = vmatpush3.bf16.msra.mxu0 %v4941_v49 }
 0x203   : > { %3577 = vmatprep.subr.bf16.mxu0 %v4944_v50 }
 0x204   : > { %3642 = vmatpush3.bf16.msra.mxu1 %v4941_v49 }
 0x205   : > { %3643 = vmatprep.subr.bf16.mxu1 %v4944_v50 }
 0x206   : > { %3578 = vmatpush3.bf16.msra.mxu0 %v4953_v53 }
 0x207   : > { %3579 = vmatprep.subr.bf16.mxu0 %v4956_v54 }
 0x208   : > { %3644 = vmatpush3.bf16.msra.mxu1 %v4953_v53 }
 0x209   : > { %3645 = vmatprep.subr.bf16.mxu1 %v4956_v54 }
 0x20a   : > { %3580 = vmatpush3.bf16.msra.mxu0 %v4965_v57 }
 0x20b   : > { %3581 = vmatprep.subr.bf16.mxu0 %v4968_v58 }
 0x20c   : > { %3646 = vmatpush3.bf16.msra.mxu1 %v4965_v57 }
 0x20d   : > { %3647 = vmatprep.subr.bf16.mxu1 %v4968_v58 }
 0x20e   : > { %3582 = vmatpush3.bf16.msra.mxu0 %v4975_v60 }
 0x20f   : > { %3611 = vmatprep.subr.bf16.mxu0 %v4978_v61 }
 0x210   : > { %3648 = vmatpush3.bf16.msra.mxu1 %v4975_v60 }
 0x211   : > { %1444 = vmatmul.mubr.bf16.vlgmr.msra.gmra.mxu0 %v5002_v22  ;;  %3677 = vmatprep.subr.bf16.mxu1 %v4978_v61 }
 0x212   : > { %3612 = vmatpush3.bf16.msra.mxu0 %v5006_v24  ;;  %1524 = vmatprep.mubr.bf16.mxu0 %v5151_v2 }
 0x213   : > { %1567 = vmatmul.mubr.bf16.vlgmr.msra.gmra.mxu1 %v5075_v8  ;;  %3613 = vmatprep.subr.bf16.mxu0 %v5012_v26 }
 0x214   : > { %3678 = vmatpush3.bf16.msra.mxu1 %v5006_v24  ;;  %1647 = vmatprep.mubr.bf16.mxu1 %v5156_v10 }
 0x215   : > { %3679 = vmatprep.subr.bf16.mxu1 %v5012_v26 }
 0x216   : > { %3614 = vmatpush3.bf16.msra.mxu0 %v5019_v27 }
 0x217   : > { %3615 = vmatprep.subr.bf16.mxu0 %v5023_v28 }
 0x218   : > { %3680 = vmatpush3.bf16.msra.mxu1 %v5019_v27 }
 0x219   : > { %3681 = vmatprep.subr.bf16.mxu1 %v5023_v28 }
 0x21a   : > { %3616 = vmatpush3.bf16.msra.mxu0 %v5027_v62 }
 0x21b   : > { %3617 = vmatprep.subr.bf16.mxu0 %v5031_v63 }
 0x21c   : > { %3682 = vmatpush3.bf16.msra.mxu1 %v5027_v62 }
 0x21d   : > { %3683 = vmatprep.subr.bf16.mxu1 %v5031_v63 }
 0x21e   : > { %3618 = vmatpush3.bf16.msra.mxu0 %v5035_v0 }
 0x21f   : > { %3619 = vmatprep.subr.bf16.mxu0 %v5039_v1 }
 0x220   : > { %3684 = vmatpush3.bf16.msra.mxu1 %v5035_v0 }
 0x221   : > { %3685 = vmatprep.subr.bf16.mxu1 %v5039_v1 }
 0x222   : > { %3620 = vmatpush3.bf16.msra.mxu0 %v5043_v3 }
 0x223   : > { %3621 = vmatprep.subr.bf16.mxu0 %v5047_v4 }
 0x224   : > { %3686 = vmatpush3.bf16.msra.mxu1 %v5043_v3 }
 0x225   : > { %3687 = vmatprep.subr.bf16.mxu1 %v5047_v4 }
 0x226   : > { %3622 = vmatpush3.bf16.msra.mxu0 %v5051_v5 }
 0x227   : > { %3623 = vmatprep.subr.bf16.mxu0 %v5055_v6 }
 0x228   : > { %3688 = vmatpush3.bf16.msra.mxu1 %v5051_v5 }
 0x229   : > { %3689 = vmatprep.subr.bf16.mxu1 %v5055_v6 }
 0x22a   : > { %3624 = vmatpush3.bf16.msra.mxu0 %v5059_v12 }
 0x22b   : > { %3625 = vmatprep.subr.bf16.mxu0 %v5063_v15 }
 0x22c   : > { %3690 = vmatpush3.bf16.msra.mxu1 %v5059_v12 }
 0x22d   : > { %3691 = vmatprep.subr.bf16.mxu1 %v5063_v15 }
 0x22e   : > { %3626 = vmatpush3.bf16.msra.mxu0 %v5067_v18 }
 0x22f   : > { %3655 = vmatprep.subr.bf16.mxu0 %v4878_v29 }
 0x230   : > { %3692 = vmatpush3.bf16.msra.mxu1 %v5067_v18 }
 0x231   : > { %1525 = vmatmul.mubr.bf16.vlgmr.msra.gmra.mxu0 %v5073_v7  ;;  %3721 = vmatprep.subr.bf16.mxu1 %v4878_v29 }
 0x232   : > { %3656 = vmatpush3.bf16.msra.mxu0 %v4885_v31  ;;  %1606 = vmatprep.mubr.bf16.mxu0 %v5002_v22 }
 0x233   : > { %1648 = vmatmul.mubr.bf16.vlgmr.msra.gmra.mxu1 %v5151_v2  ;;  %3657 = vmatprep.subr.bf16.mxu0 %v4889_v32 }
 0x234   : > { %3722 = vmatpush3.bf16.msra.mxu1 %v4885_v31  ;;  %1729 = vmatprep.mubr.bf16.mxu1 %v5075_v8 }
 0x235   : > { %3723 = vmatprep.subr.bf16.mxu1 %v4889_v32 }
 0x236   : > { %3658 = vmatpush3.bf16.msra.mxu0 %v4899_v35 }
 0x237   : > { %3659 = vmatprep.subr.bf16.mxu0 %v4902_v36 }
 0x238   : > { %3724 = vmatpush3.bf16.msra.mxu1 %v4899_v35 }
 0x239   : > { %3725 = vmatprep.subr.bf16.mxu1 %v4902_v36 }
 0x23a   : > { %3660 = vmatpush3.bf16.msra.mxu0 %v4911_v39 }
 0x23b   : > { %3661 = vmatprep.subr.bf16.mxu0 %v4914_v40 }
 0x23c   : > { %3726 = vmatpush3.bf16.msra.mxu1 %v4911_v39 }
 0x23d   : > { %3727 = vmatprep.subr.bf16.mxu1 %v4914_v40 }
 0x23e   : > { %3662 = vmatpush3.bf16.msra.mxu0 %v4923_v43 }
 0x23f   : > { %3663 = vmatprep.subr.bf16.mxu0 %v4926_v44 }
 0x240   : > { %3728 = vmatpush3.bf16.msra.mxu1 %v4923_v43 }
 0x241   : > { %3729 = vmatprep.subr.bf16.mxu1 %v4926_v44 }
 0x242   : > { %3664 = vmatpush3.bf16.msra.mxu0 %v4935_v47 }
 0x243   : > { %3665 = vmatprep.subr.bf16.mxu0 %v4938_v48 }
 0x244   : > { %3730 = vmatpush3.bf16.msra.mxu1 %v4935_v47 }
 0x245   : > { %3731 = vmatprep.subr.bf16.mxu1 %v4938_v48 }
 0x246   : > { %3666 = vmatpush3.bf16.msra.mxu0 %v4947_v51 }
 0x247   : > { %3667 = vmatprep.subr.bf16.mxu0 %v4950_v52 }
 0x248   : > { %3732 = vmatpush3.bf16.msra.mxu1 %v4947_v51 }
 0x249   : > { %3733 = vmatprep.subr.bf16.mxu1 %v4950_v52 }
 0x24a   : > { %3668 = vmatpush3.bf16.msra.mxu0 %v4959_v55 }
 0x24b   : > { %3669 = vmatprep.subr.bf16.mxu0 %v4962_v56 }
 0x24c   : > { %3734 = vmatpush3.bf16.msra.mxu1 %v4959_v55 }
 0x24d   : > { %3735 = vmatprep.subr.bf16.mxu1 %v4962_v56 }
 0x24e   : > { %3670 = vmatpush3.bf16.msra.mxu0 %v4971_v59 }
 0x24f   : > { %3699 = vmatprep.subr.bf16.mxu0 %v4882_v30 }
 0x250   : > { %3736 = vmatpush3.bf16.msra.mxu1 %v4971_v59 }
 0x251   : > { %1607 = vmatmul.mubr.bf16.vlgmr.msra.gmra.mxu0 %v5008_v25  ;;  %3765 = vmatprep.subr.bf16.mxu1 %v4882_v30  ;;  %v3473_v23 = vpop.f32.mrf.mxu1 }
 0x252   : > { %3700 = vmatpush3.bf16.msra.mxu0 %v4891_v33  ;;  %1689 = vmatprep.mubr.bf16.mxu0 %v5151_v2 }
 0x253   : > { %1730 = vmatmul.mubr.bf16.vlgmr.msra.gmra.mxu1 %v5002_v22  ;;  %3701 = vmatprep.subr.bf16.mxu0 %v4894_v34  ;;  %v3474_v11 = vpop.f32.mrf.mxu1 }
 0x254   : > { %3766 = vmatpush3.bf16.msra.mxu1 %v4891_v33  ;;  %1812 = vmatprep.mubr.bf16.mxu1 %v5156_v10  ;;  %v3475_v13 = vadd.f32 %v3474_v11, %v3473_v23  ;;  %v1737_v33 = vld [vmem:[#allocation2 + $0x24] sm:$0xf] }
 0x255   : > { %3767 = vmatprep.subr.bf16.mxu1 %v4894_v34  ;;  %v3476_v25 = vpop.f32.mrf.mxu1 }
 0x256   : > { %3702 = vmatpush3.bf16.msra.mxu0 %v4905_v37 }
 0x257   : > { %3703 = vmatprep.subr.bf16.mxu0 %v4908_v38  ;;  %v3477_v30 = vpop.f32.mrf.mxu1 }
 0x258   : > { %3768 = vmatpush3.bf16.msra.mxu1 %v4905_v37  ;;  %v4321_v30 = vld [vmem:[#allocation8 + $0xa8] sm:$0xff]  }
 0x259   : > { %3769 = vmatprep.subr.bf16.mxu1 %v4908_v38  ;;  %v1860_v38 = vld [vmem:[#allocation2 + $0x28] sm:$0xf] }
 0x25a   : > { %3704 = vmatpush3.bf16.msra.mxu0 %v4917_v41 }
 0x25b   : > { %3705 = vmatprep.subr.bf16.mxu0 %v4920_v42 }
 0x25c   : > { %3770 = vmatpush3.bf16.msra.mxu1 %v4917_v41 }
 0x25d   : > { %3771 = vmatprep.subr.bf16.mxu1 %v4920_v42 }
 0x25e   : > { %3706 = vmatpush3.bf16.msra.mxu0 %v4929_v45 }
 0x25f   : > { %3707 = vmatprep.subr.bf16.mxu0 %v4932_v46 }
 0x260   : > { %3772 = vmatpush3.bf16.msra.mxu1 %v4929_v45 }
 0x261   : > { %3773 = vmatprep.subr.bf16.mxu1 %v4932_v46 }
 0x262   : > { %3708 = vmatpush3.bf16.msra.mxu0 %v4941_v49 }
 0x263   : > { %3709 = vmatprep.subr.bf16.mxu0 %v4944_v50 }
 0x264   : > { %3774 = vmatpush3.bf16.msra.mxu1 %v4941_v49 }
 0x265   : > { %3775 = vmatprep.subr.bf16.mxu1 %v4944_v50 }
 0x266   : > { %3710 = vmatpush3.bf16.msra.mxu0 %v4953_v53 }
 0x267   : > { %3711 = vmatprep.subr.bf16.mxu0 %v4956_v54 }
 0x268   : > { %3776 = vmatpush3.bf16.msra.mxu1 %v4953_v53 }
 0x269   : > { %3777 = vmatprep.subr.bf16.mxu1 %v4956_v54 }
 0x26a   : > { %3712 = vmatpush3.bf16.msra.mxu0 %v4965_v57 }
 0x26b   : > { %3713 = vmatprep.subr.bf16.mxu0 %v4968_v58 }
 0x26c   : > { %3778 = vmatpush3.bf16.msra.mxu1 %v4965_v57 }
 0x26d   : > { %3779 = vmatprep.subr.bf16.mxu1 %v4968_v58  ;;  %v4300_v58 = vld [vmem:[#allocation8 + $0x78] sm:$0xff]  }
 0x26e   : > { %3714 = vmatpush3.bf16.msra.mxu0 %v4975_v60 }
 0x26f   : > { %3743 = vmatprep.subr.bf16.mxu0 %v4978_v61 }
 0x270   : > { %3780 = vmatpush3.bf16.msra.mxu1 %v4975_v60  ;;  %v4301_v60 = vld [vmem:[#allocation8 + $0x38] sm:$0xff]  }
 0x271   : > { %1690 = vmatmul.mubr.bf16.vlgmr.msra.gmra.mxu0 %v5073_v7  ;;  %v3451_v34 = vpop.f32.mrf.mxu0  ;;  %v3517_v37 = vpop.f32.mrf.mxu1  ;;  %3809 = vmatprep.subr.bf16.mxu1 %v4978_v61 }
 0x272   : > { %3744 = vmatpush3.bf16.msra.mxu0 %v5006_v24  ;;  %1770 = vmatprep.mubr.bf16.mxu0 %v1737_v33 }
 0x273   : > { %1813 = vmatmul.mubr.bf16.vlgmr.msra.gmra.mxu1 %v5151_v2  ;;  %v3452_v41 = vpop.f32.mrf.mxu0  ;;  %v3518_v42 = vpop.f32.mrf.mxu1  ;;  %3745 = vmatprep.subr.bf16.mxu0 %v5012_v26 }
 0x274   : > { %3810 = vmatpush3.bf16.msra.mxu1 %v5006_v24  ;;  %v3453_v45 = vadd.f32 %v3452_v41, %v3451_v34  ;;  %v5270_v46 = vadd.f32 %v3518_v42, %v3517_v37  ;;  %1893 = vmatprep.mubr.bf16.mxu1 %v1860_v38  ;;  %v4302_v24 = vld [vmem:[#allocation8 + $0x70] sm:$0xff]   ;;  %v4322_v37 = vld [vmem:[#allocation8 + $0xe0] sm:$0xff]   ;;  %v4341_v41 = vld [vmem:[#allocation8 + $0xa8] sm:$0xff]  }
 0x275   : > { %v3454_v49 = vpop.f32.mrf.mxu0  ;;  %v3520_v50 = vpop.f32.mrf.mxu1  ;;  %3811 = vmatprep.subr.bf16.mxu1 %v5012_v26  ;;  %v1905_v26 = vld [vmem:[#allocation2 + $0x1c] sm:$0xf] }
 0x276   : > { %v1111_v53 = vadd.f32 %v3475_v13, %v3453_v45  ;;  %3746 = vmatpush3.bf16.msra.mxu0 %v5019_v27  ;;  %v4343_v45 = vld [vmem:[#allocation8 + $0xe0] sm:$0xff]   ;;  %v4324_v50 = vld [vmem:[#allocation8 + $0xd8] sm:$0xff]  }
 0x277   : > { %v3455_v54 = vpop.f32.mrf.mxu0  ;;  %v3521_v57 = vpop.f32.mrf.mxu1  ;;  %3747 = vmatprep.subr.bf16.mxu0 %v5023_v28  ;;  %v4323_v49 = vld [vmem:[#allocation8 + $0xa0] sm:$0xff]  }
 0x278   : > { %3812 = vmatpush3.bf16.msra.mxu1 %v5019_v27  ;;  %v4347_v54 = vld [vmem:[#allocation8 + $0xd8] sm:$0xff]  }
 0x279   : > { %3813 = vmatprep.subr.bf16.mxu1 %v5023_v28  ;;  %v4325_v57 = vld [vmem:[#allocation8 + $0x98] sm:$0xff]  }
 0x27a   : > { %3748 = vmatpush3.bf16.msra.mxu0 %v5027_v62 }
 0x27b   : > { %3749 = vmatprep.subr.bf16.mxu0 %v5031_v63 }
 0x27c   : > { %3814 = vmatpush3.bf16.msra.mxu1 %v5027_v62 }
 0x27d   : > { %3815 = vmatprep.subr.bf16.mxu1 %v5031_v63  ;;  %v4303_v63 = vld [vmem:[#allocation8 + $0x30] sm:$0xff]  }
 0x27e   : > { %3750 = vmatpush3.bf16.msra.mxu0 %v5035_v0 }
 0x27f   : > { %3751 = vmatprep.subr.bf16.mxu0 %v5039_v1 }
 0x280   : > { %3816 = vmatpush3.bf16.msra.mxu1 %v5035_v0 }
 0x281   : > { %3817 = vmatprep.subr.bf16.mxu1 %v5039_v1 }
 0x282   : > { %3752 = vmatpush3.bf16.msra.mxu0 %v5043_v3 }
 0x283   : > { %3753 = vmatprep.subr.bf16.mxu0 %v5047_v4 }
 0x284   : > { %3818 = vmatpush3.bf16.msra.mxu1 %v5043_v3  ;;  %v4304_v3 = vld [vmem:[#allocation8 + $0x68] sm:$0xff]  }
 0x285   : > { %3819 = vmatprep.subr.bf16.mxu1 %v5047_v4 }
 0x286   : > { %3754 = vmatpush3.bf16.msra.mxu0 %v5051_v5 }
 0x287   : > { %3755 = vmatprep.subr.bf16.mxu0 %v5055_v6 }
 0x288   : > { %3820 = vmatpush3.bf16.msra.mxu1 %v5051_v5 }
 0x289   : > { %3821 = vmatprep.subr.bf16.mxu1 %v5055_v6  ;;  %v4306_v6 = vld [vmem:[#allocation8 + $0x60] sm:$0xff]  }
 0x28a   : > { %3756 = vmatpush3.bf16.msra.mxu0 %v5059_v12 }
 0x28b   : > { %3757 = vmatprep.subr.bf16.mxu0 %v5063_v15 }
 0x28c   : > { %3822 = vmatpush3.bf16.msra.mxu1 %v5059_v12  ;;  %v4307_v12 = vld [vmem:[#allocation8 + $0x20] sm:$0xff]  }
 0x28d   : > { %3823 = vmatprep.subr.bf16.mxu1 %v5063_v15  ;;  %v4308_v15 = vld [vmem:[#allocation8 + $0x58] sm:$0xff]  }
 0x28e   : > { %3758 = vmatpush3.bf16.msra.mxu0 %v5067_v18 }
 0x28f   : > { %3787 = vmatprep.subr.bf16.mxu0 %v4878_v29 }
 0x290   : > { %3824 = vmatpush3.bf16.msra.mxu1 %v5067_v18  ;;  %v4316_v18 = vld [vmem:[#allocation8 + $0xf8] sm:$0xff]  }
 0x291   : > { %1771 = vmatmul.mubr.bf16.vlgmr.msra.gmra.mxu0 %v5156_v10  ;;  %v3495_v61 = vpop.f32.mrf.mxu0  ;;  %v3561_v22 = vpop.f32.mrf.mxu1  ;;  %3853 = vmatprep.subr.bf16.mxu1 %v4300_v58  ;;  %v4337_v10 = vld [vmem:[#allocation8 + $0xb0] sm:$0xff]  }
 0x292   : > { %3788 = vmatpush3.bf16.msra.mxu0 %v4885_v31  ;;  %1852 = vmatprep.mubr.bf16.mxu0 %v5073_v7  ;;  %v4317_v7 = vld [vmem:[#allocation8 + $0xb8] sm:$0xff]   ;;  %v4326_v58 = vld [vmem:[#allocation8 + $0xd0] sm:$0xff]  }
 0x293   : > { %1894 = vmatmul.mubr.bf16.vlgmr.msra.gmra.mxu1 %v1737_v33  ;;  %v3496_v27 = vpop.f32.mrf.mxu0  ;;  %v3562_v28 = vpop.f32.mrf.mxu1  ;;  %3789 = vmatprep.subr.bf16.mxu0 %v4889_v32  ;;  %v4305_v32 = vld [vmem:[#allocation8 + $0x28] sm:$0xff]  }
 0x294   : > { %3854 = vmatpush3.bf16.msra.mxu1 %v4301_v60  ;;  %2236 = vmatprep.mubr.bf16.mxu1 %v1905_v26  ;;  %v3497_v29 = vadd.f32 %v3496_v27, %v3495_v61  ;;  %v5304_v62 = vadd.f32 %v3562_v28, %v3561_v22  ;;  %v4349_v60 = vld [vmem:[#allocation8 + $0x98] sm:$0xff]   ;;  %v4351_v61 = vld [vmem:[#allocation8 + $0xd0] sm:$0xff]   ;;  %v4355_v27 = vld [vmem:[#allocation8 + $0xc8] sm:$0xff]  }
 0x295   : > { %v3498_v0 = vpop.f32.mrf.mxu0  ;;  %v3564_v1 = vpop.f32.mrf.mxu1  ;;  %3855 = vmatprep.subr.bf16.mxu1 %v4302_v24  ;;  %v4327_v22 = vld [vmem:[#allocation8 + $0x90] sm:$0xff]   ;;  %v4328_v24 = vld [vmem:[#allocation8 + $0xc8] sm:$0xff]  }
 0x296   : > { %v5306_v4 = vadd.f32 %v3497_v29, %v1111_v53  ;;  %3790 = vmatpush3.bf16.msra.mxu0 %v4899_v35  ;;  %v4309_v35 = vld [vmem:[#allocation8 + $0x18] sm:$0xff]   ;;  %v4345_v53 = vld [vmem:[#allocation8 + $0xa0] sm:$0xff]   ;;  %v4353_v26 = vld [vmem:[#allocation8 + $0x90] sm:$0xff]  }
 0x297   : > { %v3499_v31 = vpop.f32.mrf.mxu0  ;;  %v3565_v5 = vpop.f32.mrf.mxu1  ;;  %3791 = vmatprep.subr.bf16.mxu0 %v4902_v36  ;;  %v4310_v36 = vld [vmem:[#allocation8 + $0x50] sm:$0xff]   ;;  %v4329_v28 = vld [vmem:[#allocation8 + $0x88] sm:$0xff]   ;;  %v4330_v29 = vld [vmem:[#allocation8 + $0xc0] sm:$0xff]  }
 0x298   : > { %3856 = vmatpush3.bf16.msra.mxu1 %v4303_v63  ;;  %v4359_v63 = vld [vmem:[#allocation8 + $0xc0] sm:$0xff]   ;;  %v4334_v1 = vld [vmem:[#allocation8 + $0x178] sm:$0xff]  }
 0x299   : > { %3857 = vmatprep.subr.bf16.mxu1 %v4304_v3  ;;  %v4332_v0 = vld [vmem:[#allocation8 + $0x80] sm:$0xff]   ;;  %v4363_v31 = vld [vmem:[#allocation8 + $0x178] sm:$0xff]  }
 0x29a   : > { %3792 = vmatpush3.bf16.msra.mxu0 %v4911_v39  ;;  %v4311_v39 = vld [vmem:[#allocation8 + $0x10] sm:$0xff]   ;;  %v4361_v3 = vld [vmem:[#allocation8 + $0x80] sm:$0xff]   ;;  %v4336_v5 = vld [vmem:[#allocation8 + $0x138] sm:$0xff]  }
 0x29b   : > { %3793 = vmatprep.subr.bf16.mxu0 %v4914_v40  ;;  %v4312_v40 = vld [vmem:[#allocation8 + $0x48] sm:$0xff]  }
 0x29c   : > { %3858 = vmatpush3.bf16.msra.mxu1 %v4305_v32  ;;  %v4338_v32 = vld [vmem:[#allocation8 + $0x170] sm:$0xff]  }
 0x29d   : > { %3859 = vmatprep.subr.bf16.mxu1 %v4306_v6  ;;  %v2245_v6 = vld [vmem:[#allocation2 + $0x2c] sm:$0xf] }
 0x29e   : > { %3794 = vmatpush3.bf16.msra.mxu0 %v4923_v43  ;;  %v4313_v43 = vld [vmem:[#allocation8 + $0x8] sm:$0xff]  }
 0x29f   : > { %3795 = vmatprep.subr.bf16.mxu0 %v4926_v44  ;;  %v4314_v44 = vld [vmem:[#allocation8 + $0x40] sm:$0xff]  }
 0x2a0   : > { %3860 = vmatpush3.bf16.msra.mxu1 %v4307_v12  ;;  %v1938_v12 = vld [vmem:[#allocation2 + $0x20] sm:$0xf] }
 0x2a1   : > { %3861 = vmatprep.subr.bf16.mxu1 %v4308_v15  ;;  %v2451_v15 = vld [vmem:[#allocation2 + $0x24] sm:$0xf] }
 0x2a2   : > { %3796 = vmatpush3.bf16.msra.mxu0 %v4935_v47  ;;  %v4315_v47 = vld [vmem:[#allocation8] sm:$0xff]  }
 0x2a3   : > { %3797 = vmatprep.subr.bf16.mxu0 %v4938_v48  ;;  %v4331_v48 = vld [vmem:[#allocation8 + $0xf8] sm:$0xff]  }
 0x2a4   : > { %3862 = vmatpush3.bf16.msra.mxu1 %v4309_v35  ;;  %v4365_v35 = vld [vmem:[#allocation8 + $0x138] sm:$0xff]  }
 0x2a5   : > { %3863 = vmatprep.subr.bf16.mxu1 %v4310_v36 }
 0x2a6   : > { %3798 = vmatpush3.bf16.msra.mxu0 %v4947_v51  ;;  %v4318_v51 = vld [vmem:[#allocation8 + $0xf0] sm:$0xff]  }
 0x2a7   : > { %3799 = vmatprep.subr.bf16.mxu0 %v4950_v52  ;;  %v4333_v52 = vld [vmem:[#allocation8 + $0xb8] sm:$0xff]  }
 0x2a8   : > { %3864 = vmatpush3.bf16.msra.mxu1 %v4311_v39  ;;  %v4367_v39 = vld [vmem:[#allocation8 + $0x170] sm:$0xff]  }
 0x2a9   : > { %3865 = vmatprep.subr.bf16.mxu1 %v4312_v40  ;;  %v2758_v40 = vld [vmem:[#allocation2 + $0x30] sm:$0xf] }
 0x2aa   : > { %3800 = vmatpush3.bf16.msra.mxu0 %v4959_v55  ;;  %v4335_v55 = vld [vmem:[#allocation8 + $0xf0] sm:$0xff]  }
 0x2ab   : > { %3801 = vmatprep.subr.bf16.mxu0 %v4962_v56  ;;  %v1904_v56 = vld [vmem:[#allocation2 + $0x18] sm:$0xf] }
 0x2ac   : > { %3866 = vmatpush3.bf16.msra.mxu1 %v4313_v43  ;;  %v4340_v43 = vld [vmem:[#allocation8 + $0x130] sm:$0xff]  }
 0x2ad   : > { %3867 = vmatprep.subr.bf16.mxu1 %v4314_v44 }
 0x2ae   : > { %3802 = vmatpush3.bf16.msra.mxu0 %v4971_v59  ;;  %v4320_v59 = vld [vmem:[#allocation8 + $0xe8] sm:$0xff]  }
 0x2af   : > { %3831 = vmatprep.subr.bf16.mxu0 %v4316_v18 }
 0x2b0   : > { %3868 = vmatpush3.bf16.msra.mxu1 %v4315_v47  ;;  %v4342_v47 = vld [vmem:[#allocation8 + $0x168] sm:$0xff]  }
 0x2b1   : > { %v3539_v16 = vpop.f32.mrf.mxu0  ;;  %1853 = vmatmul.mubr.bf16.vlgmr.msra.gmra.mxu0 %v5075_v8  ;;  %3897 = vmatprep.subr.bf16.mxu1 %v4331_v48  ;;  %v4339_v8 = vld [vmem:[#allocation8 + $0xe8] sm:$0xff]  }
 0x2b2   : > { %3832 = vmatpush3.bf16.msra.mxu0 %v4317_v7  ;;  %2100 = vmatprep.mubr.bf16.mxu0 %v1939_v14  ;;  %v4369_v7 = vld [vmem:[#allocation8 + $0x130] sm:$0xff]  }
 0x2b3   : > { %v3605_v21 = vpop.f32.mrf.mxu1  ;;  %2237 = vmatmul.mubr.bf16.vlgmr.msra.gmra.mxu1 %v1904_v56  ;;  %v3540_v9 = vpop.f32.mrf.mxu0  ;;  %3833 = vmatprep.subr.bf16.mxu0 %v4318_v51 }
 0x2b4   : > { %v3541_v2 = vadd.f32 %v3540_v9, %v3539_v16  ;;  %3898 = vmatpush3.bf16.msra.mxu1 %v4333_v52  ;;  %2613 = vmatprep.mubr.bf16.mxu1 %v2452_v17  ;;  %v4371_v52 = vld [vmem:[#allocation8 + $0x168] sm:$0xff]  }
 0x2b5   : > { %v3606_v23 = vpop.f32.mrf.mxu1  ;;  %v3542_v11 = vpop.f32.mrf.mxu0  ;;  %3899 = vmatprep.subr.bf16.mxu1 %v4335_v55  ;;  %v4344_v17 = vld [vmem:[#allocation8 + $0x128] sm:$0xff]  }
 0x2b6   : > { %v1363_v13 = vadd.f32 %v3541_v2, %v5270_v46  ;;  %v5323_v25 = vadd.f32 %v3606_v23, %v3605_v21  ;;  %3834 = vmatpush3.bf16.msra.mxu0 %v4319_v20  ;;  %v4346_v21 = vld [vmem:[#allocation8 + $0x160] sm:$0xff]   ;;  %v4373_v9 = vld [vmem:[#allocation8 + $0x128] sm:$0xff]   ;;  %v4350_v23 = vld [vmem:[#allocation8 + $0x158] sm:$0xff]  }
 0x2b7   : > { %v3608_v33 = vpop.f32.mrf.mxu1  ;;  %v3543_v34 = vpop.f32.mrf.mxu0  ;;  %3835 = vmatprep.subr.bf16.mxu0 %v4320_v59  ;;  %v4375_v2 = vld [vmem:[#allocation8 + $0x160] sm:$0xff]  }
 0x2b8   : > { %v5326_v38 = vadd.f32 %v5304_v62, %v1363_v13  ;;  %3900 = vmatpush3.bf16.msra.mxu1 %v4337_v10  ;;  %v4357_v62 = vld [vmem:[#allocation8 + $0x88] sm:$0xff]   ;;  %v4348_v10 = vld [vmem:[#allocation8 + $0x120] sm:$0xff]   ;;  %v4352_v13 = vld [vmem:[#allocation8 + $0x118] sm:$0xff]  }
 0x2b9   : > { %v3609_v42 = vpop.f32.mrf.mxu1  ;;  %3901 = vmatprep.subr.bf16.mxu1 %v4339_v8  ;;  %v4377_v11 = vld [vmem:[#allocation8 + $0x120] sm:$0xff]   ;;  %v4379_v8 = vld [vmem:[#allocation8 + $0x158] sm:$0xff]   ;;  %v4383_v33 = vld [vmem:[#allocation8 + $0x150] sm:$0xff]  }
 0x2ba   : > { %3836 = vmatpush3.bf16.msra.mxu0 %v4321_v30  ;;  %v1410_v46 = vmax.f32 %v5306_v4, %v5326_v38  ;;  %v4381_v30 = vld [vmem:[#allocation8 + $0x118] sm:$0xff]   ;;  %v4356_v34 = vld [vmem:[#allocation8 + $0x110] sm:$0xff]   ;;  %v4387_v42 = vld [vmem:[#allocation8 + $0x148] sm:$0xff]   ;;  %v5426_v38 = vmov 0.0  }
 0x2bb   : > { %3837 = vmatprep.subr.bf16.mxu0 %v4322_v37  ;;  %v4358_v37 = vld [vmem:[#allocation8 + $0x148] sm:$0xff]   ;;  %v4395_v4 = vld [vmem:[#allocation8] sm:$0xff]  }
 0x2bc   : > { %3902 = vmatpush3.bf16.msra.mxu1 %v4341_v41  ;;  %v4385_v41 = vld [vmem:[#allocation8 + $0x110] sm:$0xff]  }
 0x2bd   : > { %3903 = vmatprep.subr.bf16.mxu1 %v4343_v45  ;;  %v4360_v45 = vld [vmem:[#allocation8 + $0x108] sm:$0xff]  }
 0x2be   : > { %3838 = vmatpush3.bf16.msra.mxu0 %v4323_v49  ;;  %v4362_v49 = vld [vmem:[#allocation8 + $0x140] sm:$0xff]  }
 0x2bf   : > { %3839 = vmatprep.subr.bf16.mxu0 %v4324_v50  ;;  %v4389_v50 = vld [vmem:[#allocation8 + $0x108] sm:$0xff]  }
 0x2c0   : > { %3904 = vmatpush3.bf16.msra.mxu1 %v4345_v53  ;;  %v4391_v53 = vld [vmem:[#allocation8 + $0x140] sm:$0xff]  }
 0x2c1   : > { %3905 = vmatprep.subr.bf16.mxu1 %v4347_v54  ;;  %v4364_v54 = vld [vmem:[#allocation8 + $0x100] sm:$0xff]  }
 0x2c2   : > { %3840 = vmatpush3.bf16.msra.mxu0 %v4325_v57  ;;  %v4366_v57 = vld [vmem:[#allocation8 + $0x78] sm:$0xff]  }
 0x2c3   : > { %3841 = vmatprep.subr.bf16.mxu0 %v4326_v58  ;;  %v4393_v58 = vld [vmem:[#allocation8 + $0x100] sm:$0xff]  }
 0x2c4   : > { %3906 = vmatpush3.bf16.msra.mxu1 %v4349_v60  ;;  %v2244_v60 = vld [vmem:[#allocation2 + $0x28] sm:$0xf] }
 0x2c5   : > { %3907 = vmatprep.subr.bf16.mxu1 %v4351_v61  ;;  %v4368_v61 = vld [vmem:[#allocation8 + $0x38] sm:$0xff]  }
 0x2c6   : > { %3842 = vmatpush3.bf16.msra.mxu0 %v4327_v22  ;;  %v4370_v22 = vld [vmem:[#allocation8 + $0x70] sm:$0xff]  }
 0x2c7   : > { %3843 = vmatprep.subr.bf16.mxu0 %v4328_v24  ;;  %v2757_v24 = vld [vmem:[#allocation2 + $0x2c] sm:$0xf] }
 0x2c8   : > { %3908 = vmatpush3.bf16.msra.mxu1 %v4353_v26 }
 0x2c9   : > { %3909 = vmatprep.subr.bf16.mxu1 %v4355_v27  ;;  %v2418_v27 = vld [vmem:[#allocation2 + $0x20] sm:$0xf] }
 0x2ca   : > { %3844 = vmatpush3.bf16.msra.mxu0 %v4329_v28  ;;  %v4372_v28 = vld [vmem:[#allocation8 + $0x30] sm:$0xff]  }
 0x2cb   : > { %3845 = vmatprep.subr.bf16.mxu0 %v4330_v29 }
 0x2cc   : > { %3910 = vmatpush3.bf16.msra.mxu1 %v4357_v62 }
 0x2cd   : > { %3911 = vmatprep.subr.bf16.mxu1 %v4359_v63  ;;  %v4374_v63 = vld [vmem:[#allocation8 + $0x68] sm:$0xff]  }
 0x2ce   : > { %3846 = vmatpush3.bf16.msra.mxu0 %v4332_v0 }
 0x2cf   : > { %3875 = vmatprep.subr.bf16.mxu0 %v4334_v1 }
 0x2d0   : > { %3912 = vmatpush3.bf16.msra.mxu1 %v4361_v3 }
 0x2d1   : > { %v3583_v36 = vpop.f32.mrf.mxu0  ;;  %2101 = vmatmul.mubr.bf16.vlgmr.msra.gmra.mxu0 %v1938_v12  ;;  %3941 = vmatprep.subr.bf16.mxu1 %v4363_v31 }
 0x2d2   : > { %3876 = vmatpush3.bf16.msra.mxu0 %v4336_v5  ;;  %2406 = vmatprep.mubr.bf16.mxu0 %v2245_v6 }
 0x2d3   : > { %v3649_v44 = vpop.f32.mrf.mxu1  ;;  %v3584_v18 = vpop.f32.mrf.mxu0  ;;  %3877 = vmatprep.subr.bf16.mxu0 %v4338_v32  ;;  %2614 = vmatmul.mubr.bf16.vlgmr.msra.gmra.mxu1 %v2451_v15  ;;  %v4376_v32 = vld [vmem:[#allocation8 + $0x28] sm:$0xff]   ;;  %v4378_v15 = vld [vmem:[#allocation8 + $0x60] sm:$0xff]  }
 0x2d4   : > { %v3585_v48 = vadd.f32 %v3584_v18, %v3583_v36  ;;  %3942 = vmatpush3.bf16.msra.mxu1 %v4365_v35  ;;  %2919 = vmatprep.mubr.bf16.mxu1 %v2758_v40  ;;  %v4382_v40 = vld [vmem:[#allocation8 + $0x58] sm:$0xff]   ;;  %v4388_v18 = vld [vmem:[#allocation8 + $0x10] sm:$0xff]  }
 0x2d5   : > { %v3650_v51 = vpop.f32.mrf.mxu1  ;;  %v3586_v14 = vpop.f32.mrf.mxu0  ;;  %3943 = vmatprep.subr.bf16.mxu1 %v4367_v39  ;;  %v4380_v39 = vld [vmem:[#allocation8 + $0x20] sm:$0xff]  }
 0x2d6   : > { %v5331_v16 = vadd.f32 %v5323_v25, %v3585_v48  ;;  %v5333_v55 = vadd.f32 %v3650_v51, %v3649_v44  ;;  %3878 = vmatpush3.bf16.msra.mxu0 %v4340_v43  ;;  %v4354_v25 = vld [vmem:[#allocation8 + $0x150] sm:$0xff]   ;;  %v4384_v43 = vld [vmem:[#allocation8 + $0x18] sm:$0xff]   ;;  %v4392_v48 = vld [vmem:[#allocation8 + $0x8] sm:$0xff]  }
 0x2d7   : > { %v3652_v56 = vpop.f32.mrf.mxu1  ;;  %v3587_v20 = vpop.f32.mrf.mxu0  ;;  %3879 = vmatprep.subr.bf16.mxu0 %v4342_v47  ;;  %v4386_v44 = vld [vmem:[#allocation8 + $0x50] sm:$0xff]   ;;  %v4390_v47 = vld [vmem:[#allocation8 + $0x48] sm:$0xff]  }
 0x2d8   : > { %3944 = vmatpush3.bf16.msra.mxu1 %v4369_v7  ;;  %v4394_v7 = vld [vmem:[#allocation8 + $0x40] sm:$0xff]  }
 0x2d9   : > { %v3653_v59 = vpop.f32.mrf.mxu1  ;;  %3945 = vmatprep.subr.bf16.mxu1 %v4371_v52 }
 0x2da   : > { %3880 = vmatpush3.bf16.msra.mxu0 %v4344_v17 }
 0x2db   : > { %3881 = vmatprep.subr.bf16.mxu0 %v4346_v21 }
 0x2dc   : > { %3946 = vmatpush3.bf16.msra.mxu1 %v4373_v9 }
 0x2dd   : > { %3947 = vmatprep.subr.bf16.mxu1 %v4375_v2 }
 0x2de   : > { %3882 = vmatpush3.bf16.msra.mxu0 %v4348_v10 }
 0x2df   : > { %3883 = vmatprep.subr.bf16.mxu0 %v4350_v23 }
 0x2e0   : > { %3948 = vmatpush3.bf16.msra.mxu1 %v4377_v11 }
 0x2e1   : > { %3949 = vmatprep.subr.bf16.mxu1 %v4379_v8 }
 0x2e2   : > { %3884 = vmatpush3.bf16.msra.mxu0 %v4352_v13 }
 0x2e3   : > { %3885 = vmatprep.subr.bf16.mxu0 %v4354_v25 }
 0x2e4   : > { %3950 = vmatpush3.bf16.msra.mxu1 %v4381_v30 }
 0x2e5   : > { %3951 = vmatprep.subr.bf16.mxu1 %v4383_v33 }
 0x2e6   : > { %3886 = vmatpush3.bf16.msra.mxu0 %v4356_v34 }
 0x2e7   : > { %3887 = vmatprep.subr.bf16.mxu0 %v4358_v37 }
 0x2e8   : > { %3952 = vmatpush3.bf16.msra.mxu1 %v4385_v41 }
 0x2e9   : > { %3953 = vmatprep.subr.bf16.mxu1 %v4387_v42 }
 0x2ea   : > { %3888 = vmatpush3.bf16.msra.mxu0 %v4360_v45 }
 0x2eb   : > { %3889 = vmatprep.subr.bf16.mxu0 %v4362_v49  ;;  %v4396_v49 = vld [vmem:[#allocation10 + $0x38] sm:$0xff]  }
 0x2ec   : > { %3954 = vmatpush3.bf16.msra.mxu1 %v4389_v50  ;;  %v4398_v50 = vld [vmem:[#allocation10 + $0x28] sm:$0xff]  }
 0x2ed   : > { %3955 = vmatprep.subr.bf16.mxu1 %v4391_v53  ;;  %v4399_v53 = vld [vmem:[#allocation10 + $0x20] sm:$0xff]  }
 0x2ee   : > { %3890 = vmatpush3.bf16.msra.mxu0 %v4364_v54 }
 0x2ef   : > { %3919 = vmatprep.subr.bf16.mxu0 %v4366_v57 }
 0x2f0   : > { %3956 = vmatpush3.bf16.msra.mxu1 %v4393_v58 }
 0x2f1   : > { %v3627_v26 = vpop.f32.mrf.mxu0  ;;  %2407 = vmatmul.mubr.bf16.vlgmr.msra.gmra.mxu0 %v2244_v60  ;;  %v4400_v60 = vld [vmem:[#allocation10 + $0x18] sm:$0xff]  }
 0x2f2   : > { %3920 = vmatpush3.bf16.msra.mxu0 %v4368_v61  ;;  %2749 = vmatprep.mubr.bf16.mxu0 %v2418_v27 }
 0x2f3   : > { %v3693_v29 = vpop.f32.mrf.mxu1  ;;  %v3628_v62 = vpop.f32.mrf.mxu0  ;;  %3921 = vmatprep.subr.bf16.mxu0 %v4370_v22  ;;  %2920 = vmatmul.mubr.bf16.vlgmr.msra.gmra.mxu1 %v2757_v24 }
 0x2f4   : > { %v3629_v0 = vadd.f32 %v3628_v62, %v3627_v26  ;;  %v4401_v62 = vld [vmem:[#allocation10 + $0x10] sm:$0xff]  }
 0x2f5   : > { %v3694_v1 = vpop.f32.mrf.mxu1  ;;  %v3630_v3 = vpop.f32.mrf.mxu0 }
 0x2f6   : > { %v1532_v31 = vadd.f32 %v3629_v0, %v5331_v16  ;;  %v3695_v5 = vadd.f32 %v3694_v1, %v3693_v29  ;;  %3922 = vmatpush3.bf16.msra.mxu0 %v4372_v28  ;;  %v4402_v1 = vld [vmem:[#allocation10 + $0x8] sm:$0xff]   ;;  %v4403_v3 = vld [vmem:[#allocation10] sm:$0xff]  }
 0x2f7   : > { %v3696_v6 = vpop.f32.mrf.mxu1  ;;  %v3631_v12 = vpop.f32.mrf.mxu0  ;;  %3923 = vmatprep.subr.bf16.mxu0 %v4374_v63 }
 0x2f8   : > { %v5339_v35 = vmax.f32 %v1410_v46, %v1532_v31  ;;  %v2417_v46 = vld [vmem:[#allocation2 + $0x1c] sm:$0xf] }
 0x2f9   : > { %v3697_v36 = vpop.f32.mrf.mxu1 }
 0x2fa   : > { %3924 = vmatpush3.bf16.msra.mxu0 %v4376_v32 }
 0x2fb   : > { %3925 = vmatprep.subr.bf16.mxu0 %v4378_v15 }
 0x2fe   : > { %3926 = vmatpush3.bf16.msra.mxu0 %v4380_v39 }
 0x2ff   : > { %3927 = vmatprep.subr.bf16.mxu0 %v4382_v40 }
 0x302   : > { %3928 = vmatpush3.bf16.msra.mxu0 %v4384_v43 }
 0x303   : > { %3929 = vmatprep.subr.bf16.mxu0 %v4386_v44 }
 0x306   : > { %3930 = vmatpush3.bf16.msra.mxu0 %v4388_v18 }
 0x307   : > { %3931 = vmatprep.subr.bf16.mxu0 %v4390_v47 }
 0x30a   : > { %3932 = vmatpush3.bf16.msra.mxu0 %v4392_v48 }
 0x30b   : > { %3933 = vmatprep.subr.bf16.mxu0 %v4394_v7 }
 0x30e   : > { %3934 = vmatpush3.bf16.msra.mxu0 %v4395_v4 }
 0x30f   : > { %4132 = vmatprep.subr.bf16.mxu0 %v5426_v38 }
 0x311   : > { %v3671_v51 = vpop.f32.mrf.mxu0  ;;  %2750 = vmatmul.mubr.bf16.vlgmr.msra.gmra.mxu0 %v2417_v46 }
 0x312   : > { %4148 = vmatprep.mubr.msk.bf16.mxu0 %vm4560_vm0, %v5426_v38  ;;  %4133 = vmatpush3.bf16.msra.mxu0 %v4396_v49  ;;  %vm2930_vm0 = vcmp.lt.s32.totalorder %v4760_v19, 64 }
 0x313   : > { %v3737_v14 = vpop.f32.mrf.mxu1  ;;  %v3672_v52 = vpop.f32.mrf.mxu0  ;;  %4134 = vmatprep.subr.bf16.mxu0 %v5426_v38 }
 0x314   : > { %v3673_v16 = vadd.f32 %v3672_v52, %v3671_v51 }
 0x315   : > { %v3738_v17 = vpop.f32.mrf.mxu1  ;;  %v3674_v56 = vpop.f32.mrf.mxu0 }
 0x316   : > { %v1609_v20 = vadd.f32 %v3673_v16, %v5333_v55  ;;  %v3739_v21 = vadd.f32 %v3738_v17, %v3737_v14  ;;  %v4397_v55 = vld [vmem:[#allocation10 + $0x30] sm:$0xff]  }
 0x317   : > { %v3740_v9 = vpop.f32.mrf.mxu1  ;;  %v3675_v59 = vpop.f32.mrf.mxu0  ;;  %4135 = vmatpush3.bf16.msra.mxu0 %v4397_v55 }
 0x318   : > { %v1655_v2 = vadd.f32 %v3695_v5, %v1609_v20  ;;  %4136 = vmatprep.subr.bf16.mxu0 %v5426_v38 }
 0x319   : > { %v3741_v10 = vpop.f32.mrf.mxu1 }
 0x31a   : > { %v1656_v23 = vmax.f32 %v5339_v35, %v1655_v2 }
 0x31b   : > { %4137 = vmatpush3.bf16.msra.mxu0 %v4398_v50  ;;  %v3349_v50 = vld [vmem:[%s5410_s3] ss:$0 sm:$0xff] }
 0x31c   : > { %4138 = vmatprep.subr.bf16.mxu0 %v5426_v38 }
 0x31f   : > { %4139 = vmatpush3.bf16.msra.mxu0 %v4399_v53 }
 0x320   : > { %4140 = vmatprep.subr.bf16.mxu0 %v5426_v38 }
 0x323   : > { %4141 = vmatpush3.bf16.msra.mxu0 %v4400_v60  ;;  %v3350_v60 = vld [vmem:[%s5412_s5] ss:$0 sm:$0xff] }
 0x324   : > { %4142 = vmatprep.subr.bf16.mxu0 %v5426_v38 }
 0x327   : > { %4143 = vmatpush3.bf16.msra.mxu0 %v4401_v62 }
 0x328   : > { %4144 = vmatprep.subr.bf16.mxu0 %v5426_v38 }
 0x32b   : > { %4145 = vmatpush3.bf16.msra.mxu0 %v4402_v1 }
 0x32c   : > { %4146 = vmatprep.subr.bf16.mxu0 %v5426_v38 }
 0x32f   : > { %4147 = vmatpush3.bf16.msra.mxu0 %v4403_v3 }
 0x331   : > { %v3715_v11 = vpop.f32.mrf.mxu0 }
 0x333   : > { %v3781_v8 = vpop.f32.mrf.mxu1  ;;  %v3716_v13 = vpop.f32.mrf.mxu0 }
 0x334   : > { %v3717_v25 = vadd.f32 %v3716_v13, %v3715_v11 }
 0x335   : > { %v3782_v30 = vpop.f32.mrf.mxu1  ;;  %v3718_v33 = vpop.f32.mrf.mxu0 }
 0x336   : > { %v1732_v34 = vadd.f32 %v3739_v21, %v3717_v25  ;;  %v3783_v37 = vadd.f32 %v3782_v30, %v3781_v8 }
 0x337   : > { %v3784_v41 = vpop.f32.mrf.mxu1  ;;  %v3719_v42 = vpop.f32.mrf.mxu0 }
 0x339   : > { %v3785_v45 = vpop.f32.mrf.mxu1 }
 0x351   : > { %v3759_v54 = vpop.f32.mrf.mxu0 }
 0x353   : > { %v3760_v57 = vpop.f32.mrf.mxu0  ;;  %v3825_v58 = vpop.f32.mrf.mxu1 }
 0x354   : > { %v3761_v61 = vadd.f32 %v3760_v57, %v3759_v54 }
 0x355   : > { %v3762_v22 = vpop.f32.mrf.mxu0  ;;  %v3826_v24 = vpop.f32.mrf.mxu1 }
 0x356   : > { %v1778_v26 = vadd.f32 %v3761_v61, %v1732_v34  ;;  %v3827_v27 = vadd.f32 %v3826_v24, %v3825_v58 }
 0x357   : > { %v3763_v28 = vpop.f32.mrf.mxu0  ;;  %v3828_v29 = vpop.f32.mrf.mxu1 }
 0x358   : > { %v1779_v63 = vmax.f32 %v1656_v23, %v1778_v26 }
 0x359   : > { %v3829_v0 = vpop.f32.mrf.mxu1 }
 0x371   : > { %v3803_v31 = vpop.f32.mrf.mxu0 }
 0x373   : > { %v3869_v5 = vpop.f32.mrf.mxu1  ;;  %v3804_v32 = vpop.f32.mrf.mxu0 }
 0x374   : > { %v3805_v6 = vadd.f32 %v3804_v32, %v3803_v31 }
 0x375   : > { %v3870_v12 = vpop.f32.mrf.mxu1  ;;  %v3806_v15 = vpop.f32.mrf.mxu0 }
 0x376   : > { %v1855_v35 = vadd.f32 %v3805_v6, %v3783_v37  ;;  %v3871_v36 = vadd.f32 %v3870_v12, %v3869_v5 }
 0x377   : > { %v3872_v39 = vpop.f32.mrf.mxu1  ;;  %v3807_v40 = vpop.f32.mrf.mxu0 }
 0x378   : > { %v1901_v43 = vadd.f32 %v3827_v27, %v1855_v35 }
 0x379   : > { %v3873_v44 = vpop.f32.mrf.mxu1 }
 0x37a   : > { %v1902_v18 = vmax.f32 %v1779_v63, %v1901_v43 }
 0x391   : > { %v3847_v47 = vpop.f32.mrf.mxu0 }
 0x393   : > { %v3848_v48 = vpop.f32.mrf.mxu0  ;;  %v3913_v7 = vpop.f32.mrf.mxu1 }
 0x394   : > { %v3849_v4 = vadd.f32 %v3848_v48, %v3847_v47 }
 0x395   : > { %v3850_v46 = vpop.f32.mrf.mxu0  ;;  %v3914_v38 = vpop.f32.mrf.mxu1 }
 0x396   : > { %v2239_v51 = vadd.f32 %v3871_v36, %v3849_v4  ;;  %v3915_v33 = vadd.f32 %v3914_v38, %v3913_v7 }
 0x397   : > { %v3851_v14 = vpop.f32.mrf.mxu0  ;;  %v3916_v52 = vpop.f32.mrf.mxu1 }
 0x399   : > { %v3917_v16 = vpop.f32.mrf.mxu1 }
 0x3b1   : > { %v3891_v17 = vpop.f32.mrf.mxu0 }
 0x3b3   : > { %v3892_v56 = vpop.f32.mrf.mxu0  ;;  %v3957_v20 = vpop.f32.mrf.mxu1 }
 0x3b4   : > { %v3893_v21 = vadd.f32 %v3892_v56, %v3891_v17 }
 0x3b5   : > { %v3894_v9 = vpop.f32.mrf.mxu0  ;;  %v3958_v59 = vpop.f32.mrf.mxu1 }
 0x3b6   : > { %v2414_v2 = vadd.f32 %v3893_v21, %v2239_v51  ;;  %v3959_v41 = vadd.f32 %v3958_v59, %v3957_v20 }
 0x3b7   : > { %v3895_v10 = vpop.f32.mrf.mxu0  ;;  %v3960_v23 = vpop.f32.mrf.mxu1 }
 0x3b8   : > { %v2415_v11 = vmax.f32 %v1902_v18, %v2414_v2 }
 0x3b9   : > { %v3961_v8 = vpop.f32.mrf.mxu1 }
 0x3ba   : > { %v2933_v13 = vsel %vm2930_vm0, %v2415_v11, %v1902_v18 }
 0x3d1   : > { %v3935_v25 = vpop.f32.mrf.mxu0 }
 0x3d3   : > { %v3936_v30 = vpop.f32.mrf.mxu0 }
 0x3d4   : > { %v3937_v34 = vadd.f32 %v3936_v30, %v3935_v25 }
 0x3d5   : > { %v3938_v37 = vpop.f32.mrf.mxu0 }
 0x3d6   : > { %v2752_v42 = vadd.f32 %v3937_v34, %v3915_v33 }
 0x3d7   : > { %v3939_v45 = vpop.f32.mrf.mxu0 }
 0x3d8   : > { %v2927_v49 = vadd.f32 %v3959_v41, %v2752_v42 }
 0x3da   : > { %v2928_v55 = vmax.f32 %v2415_v11, %v2927_v49 }
 0x3dc   : > { %v2934_v53 = vsel %vm2929_vm2, %v2928_v55, %v2933_v13 }
 0x3dd   : > { %v2942_v54 = vadd.f32 %v3349_v50, %v2934_v53 }
 0x3df   : > { %v2943_v57 = vmax.f32 %v2942_v54, 0.0 }
 0x3e1   : > { %v2944_v58 = vpack.c.bf16 %v2943_v57, %v2943_v57 }
 0x3e3   : > { %4149 = vmatmul.mubr.bf16.vlgmr.msra.gmra.mxu0 %v2944_v58 }
 0x4a3   : > { %v3050_v19 = vpop.f32.mrf.mxu0 }
 0x4a4   : > { %v3051_v61 = vadd.f32 %v3350_v60, %v3050_v19 }
 0x4a5   : > { %v4150_v22 = vpop.f32.mrf.mxu0 }
 0x4a6   : > { %3056 = vst [vmem:[%s286_s11] sm:$0xff] %v3051_v61 }
 0x4a7   : > { %v3053_v24 = vpop.f32.mrf.mxu0 }
 0x4a8   : > { %4495 = shalt.err (!%p4492_p0)
}
 0x4a9   : > { %s4496_s19 = scalar_lea.hbm %s5366_s12, 128  ;;  %s4500_s28 = scalar_lea.hbm %s5413_s6, 256 }
 0x4aa   : > { %p4497_p6 = scmp.ne.s32.totalorder %s5366_s12, %s4496_s19  ;;  %p4501_p1 = scmp.lt.s32.totalorder %s5366_s12, %s5413_s6 }
 0x4ab   : > { %p4502_p5 = scmp.lt.s32.totalorder %s4500_s28, %s4496_s19 }
 0x4ac   : > { %p4498_p9 = pnand %p4497_p6, %p5427_p12 }
 0x4ad   : > { %p4503_p3 = por %p4502_p5, %p4501_p1 }
 0x4ae   : > { %p4499_p13 = pneg %p4498_p9 }
 0x4b0   : > { %p4504_p10 = pnand %p4503_p3, %p4499_p13 }
 0x4b2   : > { %4507 = shalt.err (!%p4504_p10)
}
 0x4b3   : > { %4164 = dma.vmem_to_hbm [thread:$0]  (%p5427_p12), %s5368_s13, 128, %s5366_s12, %s3058_s14   ;;  %v4151_v26 = vpop.f32.mrf.mxu0 }
 0x4b4 PF: > { %p4186_p2 = scmp.ge.s32.totalorder %s4550_s24, 2  ;;  %s3083_s11 = sand.u32 1, %s4538_s21  }
 0x4b5   : > { %p5428_p4 = scmp.ne.s32.totalorder %s5419_s8, 0  ;;  %s3084_s15 = scalar_lea.sflag [#allocation7], %s3083_s11 }
 0x4b7   : > { %p4177_p7 = pnand %p4186_p2, %p5428_p4 }
 0x4b9   : > { %p4178_p8 = pneg %p4177_p7 }
 0x4bb   : > { %4533 = dma.done.wait (%p4178_p8), %s3084_s15, 128  }
 0x4bc   : > { %4535 = vsyncadd (%p4178_p8), %s3084_s15, 4294967168  ;;  %p18_p11 = scmp.ge.s32.totalorder %s4629_s27, 4   ;;  %s5429_s21 = smov %s4542_s22 }
 0x4bd   : > { %s5430_s22 = smov %s4546_s23  ;;  %s5431_s23 = smov %s4640_s30 }
 0x4be   : > { %s5432_s24 = smov %s4629_s27  ;;  %20 = sbr.rel (!%p18_p11) target bundleno = 5 (0x5), region = 106 }
 0x4c3   :  { %3089 = vsyncpa [#allocation6], 1 }
 0x4c4   :  { %3091 = vsyncpa [#allocation6 + $0x1], 1 }
 0x4c5   :  { %3092 = vsyncpa [#allocation9], 1 }
 0x4c6   :  { %3093 = vsyncpa [#allocation7], 1 }
 0x4c7   :  { %3095 = vsyncpa [#allocation7 + $0x1], 1 }

</bundles_post_ra>
